<compile_context>
chip_gen: v7x
topology: tpu7x:2x2x1
jax: 0.10.0
libtpu: 0.0.40
codegen_flags: <defaults>
</compile_context>

<pallas_src>
import numpy as np
import jax
import jax.numpy as jnp
from jax.experimental import pallas as pl
from jax.experimental.pallas import tpu as pltpu


COMPUTE_DTYPE = jnp.bfloat16   # MXU operand dtype (accumulation is always f32)


# ------------------------------- fused kernel -------------------------------

def fused_cnn_kernel(p1_ref, w1_ref, sb1_ref,
                     q2_ref, w2_ref, sb2_ref,
                     q3_ref, w3_ref, sb3_ref,
                     wfcb_ref, dmask_ref, gmat_ref,
                     o_ref):
    """Whole forward pass for ONE sample (grid iterates over the batch).

    p1_ref:    (1, K1, M1)   im2col patches of the network input
                             (K1 = kh*kw*Cin, M1 = H1*W1, spatial on lanes).
    w1_ref:    (C1, K1)      folded conv1 weights.
    sbX_ref:   (CX, 2)       f32 [scale | bias]  (eval BatchNorm + conv bias).
    q2_ref:    (T2, M1, M2)  per-tap operator = pool1_matrix @ im2col_select,
                             so conv2 = sum_t W2_t @ (y1 @ Q2_t).
    w2_ref:    (T2, C2, C1)
    q3_ref:    (T3, M2, M3)  per-tap operator = pool2_matrix @ im2col_select.
    w3_ref:    (T3, C3, C2)
    wfcb_ref:  (M3, C3*NC)   fc weight rearranged: wfcb[m, c*NC+j] = fc_w[c*M3+m, j].
    dmask_ref: (C3, C3*NC)   block-diagonal 0/1 mask.
    gmat_ref:  (C3*NC, NC)   0/1 fold matrix (stack of NCxNC identities).
    o_ref:     (1, 1, NC)    logits for this sample.
    """
    f32 = jnp.float32

    def bn_relu(acc, sb_ref):
        # acc: (C, M) f32.  sb_ref[:, 0:1] = scale, sb_ref[:, 1:2] = bias.
        return jnp.maximum(acc * sb_ref[:, 0:1] + sb_ref[:, 1:2], 0.0)

    def conv_taps(act, q_ref, w_ref):
        # act: (Cin, Min) bf16 -> conv output (Cout, Mout) f32; the previous
        # block's AvgPool and this conv's im2col are folded into q_ref.
        taps, cout, _ = w_ref.shape
        mout = q_ref.shape[2]
        acc = jnp.zeros((cout, mout), f32)
        for t in range(taps):                      # static unroll (4 or 9 taps)
            g = jnp.dot(act, q_ref[t], preferred_element_type=f32)   # (Cin, Mout)
            acc = acc + jnp.dot(w_ref[t], g.astype(w_ref.dtype),
                                preferred_element_type=f32)
        return acc

    # ---- Block1: conv as one MXU matmul over prebuilt patches + BN + ReLU ---
    a1 = jnp.dot(w1_ref[...], p1_ref[0], preferred_element_type=f32)  # (C1, M1)
    y1 = bn_relu(a1, sb1_ref)

    # ---- Block2: (pool1 + im2col) folded into Q2, conv + BN + ReLU ----------
    y2 = bn_relu(conv_taps(y1.astype(COMPUTE_DTYPE), q2_ref, w2_ref), sb2_ref)

    # ---- Block3: (pool2 + im2col) folded into Q3, conv + BN + ReLU (no pool)-
    y3 = bn_relu(conv_taps(y2.astype(COMPUTE_DTYPE), q3_ref, w3_ref), sb3_ref)

    # ---- FC (bias-free), flatten-free:
    #   out[j] = sum_{c,m} y3[c,m] * fc_w[c*M3+m, j]
    #          = (sum_rows((y3 @ wfcb) * dmask)) @ gmat
    z = jnp.dot(y3.astype(COMPUTE_DTYPE), wfcb_ref[...],
                preferred_element_type=f32)                       # (C3, C3*NC)
    col = jnp.sum(z * dmask_ref[...], axis=0, keepdims=True)      # (1, C3*NC)
    out = jnp.dot(col, gmat_ref[...], preferred_element_type=f32)  # (1, NC)
    o_ref[0] = out.astype(o_ref.dtype)


# --------------------------- host-side constants -----------------------------

def _extract_patches_cm(x, ksize, strides, padding):
    """x: (N, C, H, W) -> patches (N, KH*KW*C, Ho*Wo); K ordered (kh, kw, c)."""
    kh_s, kw_s = ksize
    sh, sw = strides
    ph, pw = padding
    n, c, h, w = x.shape
    xp = jnp.pad(x, ((0, 0), (0, 0), (ph, ph), (pw, pw)))
    ho = (h + 2 * ph - kh_s) // sh + 1
    wo = (w + 2 * pw - kw_s) // sw + 1
    taps = []
    for kh in range(kh_s):
        for kw in range(kw_s):
            sl = xp[:, :, kh:kh + sh * (ho - 1) + 1:sh,
                    kw:kw + sw * (wo - 1) + 1:sw]                # (N, C, Ho, Wo)
            taps.append(sl.reshape(n, c, ho * wo))
    return jnp.concatenate(taps, axis=1), (ho, wo)


def _pool_matrix_np(hi, wi, ksize, strides, padding):
    """(Hi*Wi, Ho*Wo) operator P so that pooled = act @ P.
    Matches torch AvgPool2d defaults (count_include_pad=True, ceil_mode=False)."""
    kh, kw = ksize
    sh, sw = strides
    ph, pw = padding
    ho = (hi + 2 * ph - kh) // sh + 1
    wo = (wi + 2 * pw - kw) // sw + 1
    inv = 1.0 / (kh * kw)
    p = np.zeros((hi * wi, ho * wo), np.float32)
    for po in range(ho):
        for qo in range(wo):
            for i in range(kh):
                for j in range(kw):
                    y = po * sh - ph + i
                    x = qo * sw - pw + j
                    if 0 <= y < hi and 0 <= x < wi:
                        p[y * wi + x, po * wo + qo] = inv
    return p, (ho, wo)


def _im2col_select_np(hi, wi, ksize, strides, padding):
    """(T, Hi*Wi, Ho*Wo) 0/1 selection operators, one per conv tap (zero
    padding handled by leaving out-of-bounds rows at 0)."""
    kh, kw = ksize
    sh, sw = strides
    ph, pw = padding
    ho = (hi + 2 * ph - kh) // sh + 1
    wo = (wi + 2 * pw - kw) // sw + 1
    s = np.zeros((kh * kw, hi * wi, ho * wo), np.float32)
    for i in range(kh):
        for j in range(kw):
            t = i * kw + j
            for po in range(ho):
                for qo in range(wo):
                    y = po * sh - ph + i
                    x = qo * sw - pw + j
                    if 0 <= y < hi and 0 <= x < wi:
                        s[t, y * wi + x, po * wo + qo] = 1.0
    return s, (ho, wo)


# ------------------------------ forward wrapper ------------------------------

@jax.jit
def cnn_3layer_fc_forward(x_nchw, params):
    # TODO(synk): Dropout2d is identity in eval/inference mode; train-mode
    # channel dropout is not implemented.
    n = x_nchw.shape[0]
    kh1, kw1, _, n1 = params["b1"]["w"].shape
    kh2, kw2, _, n2 = params["b2"]["w"].shape
    kh3, kw3, _, n3 = params["b3"]["w"].shape
    nc = params["fc_w"].shape[1]

    # Only the tiny 3-channel network input is im2col'd here; Blocks 2/3 build
    # their patches in-kernel via the Q operators (no HBM im2col inflation).
    patches1, (h1, w1s) = _extract_patches_cm(x_nchw, (kh1, kw1), (1, 1), (1, 1))
    p1 = patches1.astype(COMPUTE_DTYPE)
    k1, m1 = p1.shape[1], p1.shape[2]

    # Compile-time operators (numpy at trace time -> constants): each Q_t folds
    # the previous block's AvgPool with the next conv's tap selection.
    pool1, (hp1, wp1) = _pool_matrix_np(h1, w1s, (2, 2), (1, 1), (1, 1))
    sel2, (h2, w2s) = _im2col_select_np(hp1, wp1, (kh2, kw2), (2, 2), (0, 0))
    q2 = np.einsum("ij,tjk->tik", pool1, sel2)                  # (T2, M1, M2)
    m2 = h2 * w2s
    pool2, (hp2, wp2) = _pool_matrix_np(h2, w2s, (2, 2), (2, 2), (0, 0))
    sel3, (h3, w3s) = _im2col_select_np(hp2, wp2, (kh3, kw3), (1, 1), (2, 2))
    q3 = np.einsum("ij,tjk->tik", pool2, sel3)                  # (T3, M2, M3)
    m3 = h3 * w3s
    t2, t3 = q2.shape[0], q3.shape[0]
    assert params["fc_w"].shape[0] == n3 * m3

    # Folded weights (K ordered (kh, kw, cin) to match patches / Q operators).
    w1m = params["b1"]["w"].transpose(3, 0, 1, 2).reshape(n1, k1).astype(COMPUTE_DTYPE)
    w2t = params["b2"]["w"].transpose(0, 1, 3, 2).reshape(t2, n2, n1).astype(COMPUTE_DTYPE)
    w3t = params["b3"]["w"].transpose(0, 1, 3, 2).reshape(t3, n3, n2).astype(COMPUTE_DTYPE)
    sb1 = jnp.stack([params["b1"]["scale"], params["b1"]["bias"]], 1).astype(jnp.float32)
    sb2 = jnp.stack([params["b2"]["scale"], params["b2"]["bias"]], 1).astype(jnp.float32)
    sb3 = jnp.stack([params["b3"]["scale"], params["b3"]["bias"]], 1).astype(jnp.float32)

    # Flatten-free FC operators.
    wfc3 = params["fc_w"].reshape(n3, m3, nc)                    # row = c*m3 + m
    wfc_big = jnp.transpose(wfc3, (1, 0, 2)).reshape(m3, n3 * nc).astype(COMPUTE_DTYPE)
    dmask = np.zeros((n3, n3 * nc), np.float32)
    for c in range(n3):
        dmask[c, c * nc:(c + 1) * nc] = 1.0
    gmat = np.tile(np.eye(nc, dtype=np.float32), (n3, 1))        # (n3*nc, nc)

    flops = 2 * n * (k1 * m1 * n1
                     + t2 * (n1 * m1 * m2 + n2 * n1 * m2)
                     + t3 * (n2 * m2 * m3 + n3 * n2 * m3)
                     + n3 * m3 * n3 * nc + n3 * nc * nc)
    bytes_accessed = int(2 * (p1.size + q2.size + q3.size + w1m.size
                              + w2t.size + w3t.size + wfc_big.size)
                         + 4 * (sb1.size + sb2.size + sb3.size
                                + dmask.size + gmat.size + n * nc))

    full2 = lambda i: (0, 0)
    full3 = lambda i: (0, 0, 0)
    out = pl.pallas_call(
        fused_cnn_kernel,
        grid=(n,),
        in_specs=[
            pl.BlockSpec((1, k1, m1), lambda i: (i, 0, 0)),
            pl.BlockSpec((n1, k1), full2),
            pl.BlockSpec((n1, 2), full2),
            pl.BlockSpec((t2, m1, m2), full3),
            pl.BlockSpec((t2, n2, n1), full3),
            pl.BlockSpec((n2, 2), full2),
            pl.BlockSpec((t3, m2, m3), full3),
            pl.BlockSpec((t3, n3, n2), full3),
            pl.BlockSpec((n3, 2), full2),
            pl.BlockSpec((m3, n3 * nc), full2),
            pl.BlockSpec((n3, n3 * nc), full2),
            pl.BlockSpec((n3 * nc, nc), full2),
        ],
        out_specs=pl.BlockSpec((1, 1, nc), lambda i: (i, 0, 0)),
        out_shape=jax.ShapeDtypeStruct((n, 1, nc), jnp.float32),
        compiler_params=pltpu.CompilerParams(dimension_semantics=("parallel",)),
        cost_estimate=pl.CostEstimate(flops=flops, transcendentals=0,
                                      bytes_accessed=bytes_accessed),
    )(p1, w1m, sb1,
      jnp.asarray(q2, COMPUTE_DTYPE), w2t, sb2,
      jnp.asarray(q3, COMPUTE_DTYPE), w3t, sb3,
      wfc_big, jnp.asarray(dmask), jnp.asarray(gmat))
    return out.reshape(n, nc)


# ------------------------------ parameter init -------------------------------

def init_conv_bn(key, cin, cout, kh, kw, eps=1e-5):
    k = jax.random.split(key, 6)
    w = jax.random.normal(k[0], (kh, kw, cin, cout), jnp.float32) * 0.1
    conv_b = jax.random.normal(k[1], (cout,), jnp.float32) * 0.1
    gamma = jax.random.uniform(k[2], (cout,), jnp.float32, 0.5, 1.5)
    beta = jax.random.normal(k[3], (cout,), jnp.float32) * 0.1
    running_mean = jax.random.normal(k[4], (cout,), jnp.float32) * 0.1
    running_var = jax.random.uniform(k[5], (cout,), jnp.float32, 0.5, 1.5)
    scale = gamma / jnp.sqrt(running_var + eps)
    bias = beta + scale * (conv_b - running_mean)
    return dict(w=w, scale=scale, bias=bias)


# ----------------------- pure-JAX reference (for check) ----------------------

def reference_forward(x, params):
    """f32 reference with lax.conv / reduce_window, HIGHEST precision."""
    def block(x, p, stride, pad, pool):
        y = jax.lax.conv_general_dilated(
            x, p["w"], window_strides=stride,
            padding=[(pad[0], pad[0]), (pad[1], pad[1])],
            dimension_numbers=("NCHW", "HWIO", "NCHW"),
            precision=jax.lax.Precision.HIGHEST)
        y = y * p["scale"][None, :, None, None] + p["bias"][None, :, None, None]
        y = jnp.maximum(y, 0.0)
        if pool is not None:
            pk, ps, pp = pool
            y = jax.lax.reduce_window(
                y, 0.0, jax.lax.add,
                window_dimensions=(1, 1, pk[0], pk[1]),
                window_strides=(1, 1, ps[0], ps[1]),
                padding=((0, 0), (0, 0), (pp[0], pp[0]), (pp[1], pp[1]))
            ) / float(pk[0] * pk[1])
        return y
    y = block(x, params["b1"], (1, 1), (1, 1), ((2, 2), (1, 1), (1, 1)))
    y = block(y, params["b2"], (2, 2), (0, 0), ((2, 2), (2, 2), (0, 0)))
    y = block(y, params["b3"], (1, 1), (2, 2), None)
    flat = y.reshape(y.shape[0], -1)
    return jnp.dot(flat, params["fc_w"], precision=jax.lax.Precision.HIGHEST)


if __name__ == "__main__":
    # Small config consistent with the module: n_classes=10, n1=8, n2=16, n3=32.
    # With a 16x16 input: B1 -> 17x17, B2 -> 4x4, B3 -> 6x6, so the
    # constructor's `fc` arg (final spatial count) is 36 and fc_in = 36*n3.
    batch, img = 2, 16
    n1, n2, n3, n_classes = 8, 16, 32, 10
    fc_spatial = 6 * 6

    key = jax.random.PRNGKey(0)
    kx, kb1, kb2, kb3, kf = jax.random.split(key, 5)
    params = {
        "b1": init_conv_bn(kb1, 3, n1, 3, 3),
        "b2": init_conv_bn(kb2, n1, n2, 2, 2),
        "b3": init_conv_bn(kb3, n2, n3, 3, 3),
        # torch Linear weight is (n_classes, in); we store its transpose.
        "fc_w": jax.random.normal(kf, (fc_spatial * n3, n_classes),
                                  jnp.float32) * 0.05,
    }

    x = jax.random.normal(kx, (batch, 3, img, img), jnp.float32)  # NCHW input
    out = jax.block_until_ready(cnn_3layer_fc_forward(x, params))
    assert out.shape == (batch, n_classes), out.shape
    assert bool(jnp.all(jnp.isfinite(out)))

    # bf16 MXU operands (f32 accumulation) -> compare against an f32 reference
    # at a loose tolerance; any structural/indexing bug would be O(100%) off.
    ref = jax.block_until_ready(reference_forward(x, params))
    err = float(jnp.max(jnp.abs(out - ref)))
    scale = float(jnp.max(jnp.abs(ref)))
    assert err <= 0.1 * scale + 0.05, (err, scale)
    print("KERNEL_OK")
</pallas_src>

<mosaic_0001>
module attributes {stable_mosaic.version = 11 : i64} {
  func.func @fused_cnn_kernel(%arg0: i32, %arg1: memref<1x27x256xbf16, #tpu.memory_space<vmem>>, %arg2: memref<8x27xbf16, #tpu.memory_space<vmem>>, %arg3: memref<8x2xf32, #tpu.memory_space<vmem>>, %arg4: memref<4x256x64xbf16, #tpu.memory_space<vmem>>, %arg5: memref<4x16x8xbf16, #tpu.memory_space<vmem>>, %arg6: memref<16x2xf32, #tpu.memory_space<vmem>>, %arg7: memref<9x64x36xbf16, #tpu.memory_space<vmem>>, %arg8: memref<9x32x16xbf16, #tpu.memory_space<vmem>>, %arg9: memref<32x2xf32, #tpu.memory_space<vmem>>, %arg10: memref<36x320xbf16, #tpu.memory_space<vmem>>, %arg11: memref<32x320xf32, #tpu.memory_space<vmem>>, %arg12: memref<320x10xf32, #tpu.memory_space<vmem>>, %arg13: memref<1x1x10xf32, #tpu.memory_space<vmem>>) attributes {dimension_semantics = [#tpu.dimension_semantics<parallel>], iteration_bounds = array<i64: 2>, scalar_prefetch = 0 : i64, scratch_operands = 0 : i64, tpu.core_type = #tpu.core_type<tc>, window_params = [{transform_indices = @transform_0, window_bounds = array<i64: 1, 27, 256>}, {pipeline_mode = #tpu.pipeline_mode<synchronous>, transform_indices = @transform_1, window_bounds = array<i64: 8, 27>}, {pipeline_mode = #tpu.pipeline_mode<synchronous>, transform_indices = @transform_2, window_bounds = array<i64: 8, 2>}, {pipeline_mode = #tpu.pipeline_mode<synchronous>, transform_indices = @transform_3, window_bounds = array<i64: 4, 256, 64>}, {pipeline_mode = #tpu.pipeline_mode<synchronous>, transform_indices = @transform_4, window_bounds = array<i64: 4, 16, 8>}, {pipeline_mode = #tpu.pipeline_mode<synchronous>, transform_indices = @transform_5, window_bounds = array<i64: 16, 2>}, {pipeline_mode = #tpu.pipeline_mode<synchronous>, transform_indices = @transform_6, window_bounds = array<i64: 9, 64, 36>}, {pipeline_mode = #tpu.pipeline_mode<synchronous>, transform_indices = @transform_7, window_bounds = array<i64: 9, 32, 16>}, {pipeline_mode = #tpu.pipeline_mode<synchronous>, transform_indices = @transform_8, window_bounds = array<i64: 32, 2>}, {pipeline_mode = #tpu.pipeline_mode<synchronous>, transform_indices = @transform_9, window_bounds = array<i64: 36, 320>}, {pipeline_mode = #tpu.pipeline_mode<synchronous>, transform_indices = @transform_10, window_bounds = array<i64: 32, 320>}, {pipeline_mode = #tpu.pipeline_mode<synchronous>, transform_indices = @transform_11, window_bounds = array<i64: 320, 10>}, {transform_indices = @transform_12, window_bounds = array<i64: 1, 1, 10>}]} {
    %c0 = arith.constant 0 : index
    %c0_0 = arith.constant 0 : index
    %0 = vector.load %arg2[%c0, %c0_0] : memref<8x27xbf16, #tpu.memory_space<vmem>>, vector<8x27xbf16>
    %c0_1 = arith.constant 0 : index
    %c0_2 = arith.constant 0 : index
    %c0_3 = arith.constant 0 : index
    %1 = vector.load %arg1[%c0_1, %c0_2, %c0_3] : memref<1x27x256xbf16, #tpu.memory_space<vmem>>, vector<1x27x256xbf16>
    %2 = vector.shape_cast %1 : vector<1x27x256xbf16> to vector<27x256xbf16>
    %cst = arith.constant dense<0.000000e+00> : vector<8x256xf32>
    %3 = tpu.matmul %0, %2, %cst {dimension_numbers = #tpu.dot_dimension_numbers<[1], [0], [0], [1], [0, 0, 1, 1], [], []>} : vector<8x27xbf16>, vector<27x256xbf16>, vector<8x256xf32> -> vector<8x256xf32>
    %c0_4 = arith.constant 0 : index
    %c0_5 = arith.constant 0 : index
    %4 = vector.load %arg3[%c0_4, %c0_5] : memref<8x2xf32, #tpu.memory_space<vmem>>, vector<8x1xf32>
    %5 = vector.broadcast %4 : vector<8x1xf32> to vector<8x256xf32>
    %6 = arith.mulf %3, %5 : vector<8x256xf32>
    %c0_6 = arith.constant 0 : index
    %c1 = arith.constant 1 : index
    %7 = vector.load %arg3[%c0_6, %c1] : memref<8x2xf32, #tpu.memory_space<vmem>>, vector<8x1xf32>
    %8 = vector.broadcast %7 : vector<8x1xf32> to vector<8x256xf32>
    %9 = arith.addf %6, %8 : vector<8x256xf32>
    %cst_7 = arith.constant 0.000000e+00 : f32
    %10 = vector.broadcast %cst_7 : f32 to vector<8x256xf32>
    %11 = arith.maximumf %9, %10 : vector<8x256xf32>
    %12 = arith.truncf %11 : vector<8x256xf32> to vector<8x256xbf16>
    %cst_8 = arith.constant 0.000000e+00 : f32
    %13 = vector.broadcast %cst_8 : f32 to vector<16x64xf32>
    %c0_9 = arith.constant 0 : index
    %c0_10 = arith.constant 0 : index
    %c0_11 = arith.constant 0 : index
    %14 = vector.load %arg4[%c0_9, %c0_10, %c0_11] : memref<4x256x64xbf16, #tpu.memory_space<vmem>>, vector<1x256x64xbf16>
    %15 = vector.shape_cast %14 : vector<1x256x64xbf16> to vector<256x64xbf16>
    %cst_12 = arith.constant dense<0.000000e+00> : vector<8x64xf32>
    %16 = tpu.matmul %12, %15, %cst_12 {dimension_numbers = #tpu.dot_dimension_numbers<[1], [0], [0], [1], [0, 0, 1, 1], [], []>} : vector<8x256xbf16>, vector<256x64xbf16>, vector<8x64xf32> -> vector<8x64xf32>
    %c0_13 = arith.constant 0 : index
    %c0_14 = arith.constant 0 : index
    %c0_15 = arith.constant 0 : index
    %17 = vector.load %arg5[%c0_13, %c0_14, %c0_15] : memref<4x16x8xbf16, #tpu.memory_space<vmem>>, vector<1x16x8xbf16>
    %18 = vector.shape_cast %17 : vector<1x16x8xbf16> to vector<16x8xbf16>
    %19 = arith.truncf %16 : vector<8x64xf32> to vector<8x64xbf16>
    %cst_16 = arith.constant dense<0.000000e+00> : vector<16x64xf32>
    %20 = tpu.matmul %18, %19, %cst_16 {dimension_numbers = #tpu.dot_dimension_numbers<[1], [0], [0], [1], [0, 0, 1, 1], [], []>} : vector<16x8xbf16>, vector<8x64xbf16>, vector<16x64xf32> -> vector<16x64xf32>
    %21 = arith.addf %13, %20 : vector<16x64xf32>
    %c1_17 = arith.constant 1 : index
    %c0_18 = arith.constant 0 : index
    %c0_19 = arith.constant 0 : index
    %22 = vector.load %arg4[%c1_17, %c0_18, %c0_19] : memref<4x256x64xbf16, #tpu.memory_space<vmem>>, vector<1x256x64xbf16>
    %23 = vector.shape_cast %22 : vector<1x256x64xbf16> to vector<256x64xbf16>
    %cst_20 = arith.constant dense<0.000000e+00> : vector<8x64xf32>
    %24 = tpu.matmul %12, %23, %cst_20 {dimension_numbers = #tpu.dot_dimension_numbers<[1], [0], [0], [1], [0, 0, 1, 1], [], []>} : vector<8x256xbf16>, vector<256x64xbf16>, vector<8x64xf32> -> vector<8x64xf32>
    %c1_21 = arith.constant 1 : index
    %c0_22 = arith.constant 0 : index
    %c0_23 = arith.constant 0 : index
    %25 = vector.load %arg5[%c1_21, %c0_22, %c0_23] : memref<4x16x8xbf16, #tpu.memory_space<vmem>>, vector<1x16x8xbf16>
    %26 = vector.shape_cast %25 : vector<1x16x8xbf16> to vector<16x8xbf16>
    %27 = arith.truncf %24 : vector<8x64xf32> to vector<8x64xbf16>
    %cst_24 = arith.constant dense<0.000000e+00> : vector<16x64xf32>
    %28 = tpu.matmul %26, %27, %cst_24 {dimension_numbers = #tpu.dot_dimension_numbers<[1], [0], [0], [1], [0, 0, 1, 1], [], []>} : vector<16x8xbf16>, vector<8x64xbf16>, vector<16x64xf32> -> vector<16x64xf32>
    %29 = arith.addf %21, %28 : vector<16x64xf32>
    %c2 = arith.constant 2 : index
    %c0_25 = arith.constant 0 : index
    %c0_26 = arith.constant 0 : index
    %30 = vector.load %arg4[%c2, %c0_25, %c0_26] : memref<4x256x64xbf16, #tpu.memory_space<vmem>>, vector<1x256x64xbf16>
    %31 = vector.shape_cast %30 : vector<1x256x64xbf16> to vector<256x64xbf16>
    %cst_27 = arith.constant dense<0.000000e+00> : vector<8x64xf32>
    %32 = tpu.matmul %12, %31, %cst_27 {dimension_numbers = #tpu.dot_dimension_numbers<[1], [0], [0], [1], [0, 0, 1, 1], [], []>} : vector<8x256xbf16>, vector<256x64xbf16>, vector<8x64xf32> -> vector<8x64xf32>
    %c2_28 = arith.constant 2 : index
    %c0_29 = arith.constant 0 : index
    %c0_30 = arith.constant 0 : index
    %33 = vector.load %arg5[%c2_28, %c0_29, %c0_30] : memref<4x16x8xbf16, #tpu.memory_space<vmem>>, vector<1x16x8xbf16>
    %34 = vector.shape_cast %33 : vector<1x16x8xbf16> to vector<16x8xbf16>
    %35 = arith.truncf %32 : vector<8x64xf32> to vector<8x64xbf16>
    %cst_31 = arith.constant dense<0.000000e+00> : vector<16x64xf32>
    %36 = tpu.matmul %34, %35, %cst_31 {dimension_numbers = #tpu.dot_dimension_numbers<[1], [0], [0], [1], [0, 0, 1, 1], [], []>} : vector<16x8xbf16>, vector<8x64xbf16>, vector<16x64xf32> -> vector<16x64xf32>
    %37 = arith.addf %29, %36 : vector<16x64xf32>
    %c3 = arith.constant 3 : index
    %c0_32 = arith.constant 0 : index
    %c0_33 = arith.constant 0 : index
    %38 = vector.load %arg4[%c3, %c0_32, %c0_33] : memref<4x256x64xbf16, #tpu.memory_space<vmem>>, vector<1x256x64xbf16>
    %39 = vector.shape_cast %38 : vector<1x256x64xbf16> to vector<256x64xbf16>
    %cst_34 = arith.constant dense<0.000000e+00> : vector<8x64xf32>
    %40 = tpu.matmul %12, %39, %cst_34 {dimension_numbers = #tpu.dot_dimension_numbers<[1], [0], [0], [1], [0, 0, 1, 1], [], []>} : vector<8x256xbf16>, vector<256x64xbf16>, vector<8x64xf32> -> vector<8x64xf32>
    %c3_35 = arith.constant 3 : index
    %c0_36 = arith.constant 0 : index
    %c0_37 = arith.constant 0 : index
    %41 = vector.load %arg5[%c3_35, %c0_36, %c0_37] : memref<4x16x8xbf16, #tpu.memory_space<vmem>>, vector<1x16x8xbf16>
    %42 = vector.shape_cast %41 : vector<1x16x8xbf16> to vector<16x8xbf16>
    %43 = arith.truncf %40 : vector<8x64xf32> to vector<8x64xbf16>
    %cst_38 = arith.constant dense<0.000000e+00> : vector<16x64xf32>
    %44 = tpu.matmul %42, %43, %cst_38 {dimension_numbers = #tpu.dot_dimension_numbers<[1], [0], [0], [1], [0, 0, 1, 1], [], []>} : vector<16x8xbf16>, vector<8x64xbf16>, vector<16x64xf32> -> vector<16x64xf32>
    %45 = arith.addf %37, %44 : vector<16x64xf32>
    %c0_39 = arith.constant 0 : index
    %c0_40 = arith.constant 0 : index
    %46 = vector.load %arg6[%c0_39, %c0_40] : memref<16x2xf32, #tpu.memory_space<vmem>>, vector<16x1xf32>
    %47 = vector.broadcast %46 : vector<16x1xf32> to vector<16x64xf32>
    %48 = arith.mulf %45, %47 : vector<16x64xf32>
    %c0_41 = arith.constant 0 : index
    %c1_42 = arith.constant 1 : index
    %49 = vector.load %arg6[%c0_41, %c1_42] : memref<16x2xf32, #tpu.memory_space<vmem>>, vector<16x1xf32>
    %50 = vector.broadcast %49 : vector<16x1xf32> to vector<16x64xf32>
    %51 = arith.addf %48, %50 : vector<16x64xf32>
    %cst_43 = arith.constant 0.000000e+00 : f32
    %52 = vector.broadcast %cst_43 : f32 to vector<16x64xf32>
    %53 = arith.maximumf %51, %52 : vector<16x64xf32>
    %54 = arith.truncf %53 : vector<16x64xf32> to vector<16x64xbf16>
    %cst_44 = arith.constant 0.000000e+00 : f32
    %55 = vector.broadcast %cst_44 : f32 to vector<32x36xf32>
    %c0_45 = arith.constant 0 : index
    %c0_46 = arith.constant 0 : index
    %c0_47 = arith.constant 0 : index
    %56 = vector.load %arg7[%c0_45, %c0_46, %c0_47] : memref<9x64x36xbf16, #tpu.memory_space<vmem>>, vector<1x64x36xbf16>
    %57 = vector.shape_cast %56 : vector<1x64x36xbf16> to vector<64x36xbf16>
    %cst_48 = arith.constant dense<0.000000e+00> : vector<16x36xf32>
    %58 = tpu.matmul %54, %57, %cst_48 {dimension_numbers = #tpu.dot_dimension_numbers<[1], [0], [0], [1], [0, 0, 1, 1], [], []>} : vector<16x64xbf16>, vector<64x36xbf16>, vector<16x36xf32> -> vector<16x36xf32>
    %c0_49 = arith.constant 0 : index
    %c0_50 = arith.constant 0 : index
    %c0_51 = arith.constant 0 : index
    %59 = vector.load %arg8[%c0_49, %c0_50, %c0_51] : memref<9x32x16xbf16, #tpu.memory_space<vmem>>, vector<1x32x16xbf16>
    %60 = vector.shape_cast %59 : vector<1x32x16xbf16> to vector<32x16xbf16>
    %61 = arith.truncf %58 : vector<16x36xf32> to vector<16x36xbf16>
    %cst_52 = arith.constant dense<0.000000e+00> : vector<32x36xf32>
    %62 = tpu.matmul %60, %61, %cst_52 {dimension_numbers = #tpu.dot_dimension_numbers<[1], [0], [0], [1], [0, 0, 1, 1], [], []>} : vector<32x16xbf16>, vector<16x36xbf16>, vector<32x36xf32> -> vector<32x36xf32>
    %63 = arith.addf %55, %62 : vector<32x36xf32>
    %c1_53 = arith.constant 1 : index
    %c0_54 = arith.constant 0 : index
    %c0_55 = arith.constant 0 : index
    %64 = vector.load %arg7[%c1_53, %c0_54, %c0_55] : memref<9x64x36xbf16, #tpu.memory_space<vmem>>, vector<1x64x36xbf16>
    %65 = vector.shape_cast %64 : vector<1x64x36xbf16> to vector<64x36xbf16>
    %cst_56 = arith.constant dense<0.000000e+00> : vector<16x36xf32>
    %66 = tpu.matmul %54, %65, %cst_56 {dimension_numbers = #tpu.dot_dimension_numbers<[1], [0], [0], [1], [0, 0, 1, 1], [], []>} : vector<16x64xbf16>, vector<64x36xbf16>, vector<16x36xf32> -> vector<16x36xf32>
    %c1_57 = arith.constant 1 : index
    %c0_58 = arith.constant 0 : index
    %c0_59 = arith.constant 0 : index
    %67 = vector.load %arg8[%c1_57, %c0_58, %c0_59] : memref<9x32x16xbf16, #tpu.memory_space<vmem>>, vector<1x32x16xbf16>
    %68 = vector.shape_cast %67 : vector<1x32x16xbf16> to vector<32x16xbf16>
    %69 = arith.truncf %66 : vector<16x36xf32> to vector<16x36xbf16>
    %cst_60 = arith.constant dense<0.000000e+00> : vector<32x36xf32>
    %70 = tpu.matmul %68, %69, %cst_60 {dimension_numbers = #tpu.dot_dimension_numbers<[1], [0], [0], [1], [0, 0, 1, 1], [], []>} : vector<32x16xbf16>, vector<16x36xbf16>, vector<32x36xf32> -> vector<32x36xf32>
    %71 = arith.addf %63, %70 : vector<32x36xf32>
    %c2_61 = arith.constant 2 : index
    %c0_62 = arith.constant 0 : index
    %c0_63 = arith.constant 0 : index
    %72 = vector.load %arg7[%c2_61, %c0_62, %c0_63] : memref<9x64x36xbf16, #tpu.memory_space<vmem>>, vector<1x64x36xbf16>
    %73 = vector.shape_cast %72 : vector<1x64x36xbf16> to vector<64x36xbf16>
    %cst_64 = arith.constant dense<0.000000e+00> : vector<16x36xf32>
    %74 = tpu.matmul %54, %73, %cst_64 {dimension_numbers = #tpu.dot_dimension_numbers<[1], [0], [0], [1], [0, 0, 1, 1], [], []>} : vector<16x64xbf16>, vector<64x36xbf16>, vector<16x36xf32> -> vector<16x36xf32>
    %c2_65 = arith.constant 2 : index
    %c0_66 = arith.constant 0 : index
    %c0_67 = arith.constant 0 : index
    %75 = vector.load %arg8[%c2_65, %c0_66, %c0_67] : memref<9x32x16xbf16, #tpu.memory_space<vmem>>, vector<1x32x16xbf16>
    %76 = vector.shape_cast %75 : vector<1x32x16xbf16> to vector<32x16xbf16>
    %77 = arith.truncf %74 : vector<16x36xf32> to vector<16x36xbf16>
    %cst_68 = arith.constant dense<0.000000e+00> : vector<32x36xf32>
    %78 = tpu.matmul %76, %77, %cst_68 {dimension_numbers = #tpu.dot_dimension_numbers<[1], [0], [0], [1], [0, 0, 1, 1], [], []>} : vector<32x16xbf16>, vector<16x36xbf16>, vector<32x36xf32> -> vector<32x36xf32>
    %79 = arith.addf %71, %78 : vector<32x36xf32>
    %c3_69 = arith.constant 3 : index
    %c0_70 = arith.constant 0 : index
    %c0_71 = arith.constant 0 : index
    %80 = vector.load %arg7[%c3_69, %c0_70, %c0_71] : memref<9x64x36xbf16, #tpu.memory_space<vmem>>, vector<1x64x36xbf16>
    %81 = vector.shape_cast %80 : vector<1x64x36xbf16> to vector<64x36xbf16>
    %cst_72 = arith.constant dense<0.000000e+00> : vector<16x36xf32>
    %82 = tpu.matmul %54, %81, %cst_72 {dimension_numbers = #tpu.dot_dimension_numbers<[1], [0], [0], [1], [0, 0, 1, 1], [], []>} : vector<16x64xbf16>, vector<64x36xbf16>, vector<16x36xf32> -> vector<16x36xf32>
    %c3_73 = arith.constant 3 : index
    %c0_74 = arith.constant 0 : index
    %c0_75 = arith.constant 0 : index
    %83 = vector.load %arg8[%c3_73, %c0_74, %c0_75] : memref<9x32x16xbf16, #tpu.memory_space<vmem>>, vector<1x32x16xbf16>
    %84 = vector.shape_cast %83 : vector<1x32x16xbf16> to vector<32x16xbf16>
    %85 = arith.truncf %82 : vector<16x36xf32> to vector<16x36xbf16>
    %cst_76 = arith.constant dense<0.000000e+00> : vector<32x36xf32>
    %86 = tpu.matmul %84, %85, %cst_76 {dimension_numbers = #tpu.dot_dimension_numbers<[1], [0], [0], [1], [0, 0, 1, 1], [], []>} : vector<32x16xbf16>, vector<16x36xbf16>, vector<32x36xf32> -> vector<32x36xf32>
    %87 = arith.addf %79, %86 : vector<32x36xf32>
    %c4 = arith.constant 4 : index
    %c0_77 = arith.constant 0 : index
    %c0_78 = arith.constant 0 : index
    %88 = vector.load %arg7[%c4, %c0_77, %c0_78] : memref<9x64x36xbf16, #tpu.memory_space<vmem>>, vector<1x64x36xbf16>
    %89 = vector.shape_cast %88 : vector<1x64x36xbf16> to vector<64x36xbf16>
    %cst_79 = arith.constant dense<0.000000e+00> : vector<16x36xf32>
    %90 = tpu.matmul %54, %89, %cst_79 {dimension_numbers = #tpu.dot_dimension_numbers<[1], [0], [0], [1], [0, 0, 1, 1], [], []>} : vector<16x64xbf16>, vector<64x36xbf16>, vector<16x36xf32> -> vector<16x36xf32>
    %c4_80 = arith.constant 4 : index
    %c0_81 = arith.constant 0 : index
    %c0_82 = arith.constant 0 : index
    %91 = vector.load %arg8[%c4_80, %c0_81, %c0_82] : memref<9x32x16xbf16, #tpu.memory_space<vmem>>, vector<1x32x16xbf16>
    %92 = vector.shape_cast %91 : vector<1x32x16xbf16> to vector<32x16xbf16>
    %93 = arith.truncf %90 : vector<16x36xf32> to vector<16x36xbf16>
    %cst_83 = arith.constant dense<0.000000e+00> : vector<32x36xf32>
    %94 = tpu.matmul %92, %93, %cst_83 {dimension_numbers = #tpu.dot_dimension_numbers<[1], [0], [0], [1], [0, 0, 1, 1], [], []>} : vector<32x16xbf16>, vector<16x36xbf16>, vector<32x36xf32> -> vector<32x36xf32>
    %95 = arith.addf %87, %94 : vector<32x36xf32>
    %c5 = arith.constant 5 : index
    %c0_84 = arith.constant 0 : index
    %c0_85 = arith.constant 0 : index
    %96 = vector.load %arg7[%c5, %c0_84, %c0_85] : memref<9x64x36xbf16, #tpu.memory_space<vmem>>, vector<1x64x36xbf16>
    %97 = vector.shape_cast %96 : vector<1x64x36xbf16> to vector<64x36xbf16>
    %cst_86 = arith.constant dense<0.000000e+00> : vector<16x36xf32>
    %98 = tpu.matmul %54, %97, %cst_86 {dimension_numbers = #tpu.dot_dimension_numbers<[1], [0], [0], [1], [0, 0, 1, 1], [], []>} : vector<16x64xbf16>, vector<64x36xbf16>, vector<16x36xf32> -> vector<16x36xf32>
    %c5_87 = arith.constant 5 : index
    %c0_88 = arith.constant 0 : index
    %c0_89 = arith.constant 0 : index
    %99 = vector.load %arg8[%c5_87, %c0_88, %c0_89] : memref<9x32x16xbf16, #tpu.memory_space<vmem>>, vector<1x32x16xbf16>
    %100 = vector.shape_cast %99 : vector<1x32x16xbf16> to vector<32x16xbf16>
    %101 = arith.truncf %98 : vector<16x36xf32> to vector<16x36xbf16>
    %cst_90 = arith.constant dense<0.000000e+00> : vector<32x36xf32>
    %102 = tpu.matmul %100, %101, %cst_90 {dimension_numbers = #tpu.dot_dimension_numbers<[1], [0], [0], [1], [0, 0, 1, 1], [], []>} : vector<32x16xbf16>, vector<16x36xbf16>, vector<32x36xf32> -> vector<32x36xf32>
    %103 = arith.addf %95, %102 : vector<32x36xf32>
    %c6 = arith.constant 6 : index
    %c0_91 = arith.constant 0 : index
    %c0_92 = arith.constant 0 : index
    %104 = vector.load %arg7[%c6, %c0_91, %c0_92] : memref<9x64x36xbf16, #tpu.memory_space<vmem>>, vector<1x64x36xbf16>
    %105 = vector.shape_cast %104 : vector<1x64x36xbf16> to vector<64x36xbf16>
    %cst_93 = arith.constant dense<0.000000e+00> : vector<16x36xf32>
    %106 = tpu.matmul %54, %105, %cst_93 {dimension_numbers = #tpu.dot_dimension_numbers<[1], [0], [0], [1], [0, 0, 1, 1], [], []>} : vector<16x64xbf16>, vector<64x36xbf16>, vector<16x36xf32> -> vector<16x36xf32>
    %c6_94 = arith.constant 6 : index
    %c0_95 = arith.constant 0 : index
    %c0_96 = arith.constant 0 : index
    %107 = vector.load %arg8[%c6_94, %c0_95, %c0_96] : memref<9x32x16xbf16, #tpu.memory_space<vmem>>, vector<1x32x16xbf16>
    %108 = vector.shape_cast %107 : vector<1x32x16xbf16> to vector<32x16xbf16>
    %109 = arith.truncf %106 : vector<16x36xf32> to vector<16x36xbf16>
    %cst_97 = arith.constant dense<0.000000e+00> : vector<32x36xf32>
    %110 = tpu.matmul %108, %109, %cst_97 {dimension_numbers = #tpu.dot_dimension_numbers<[1], [0], [0], [1], [0, 0, 1, 1], [], []>} : vector<32x16xbf16>, vector<16x36xbf16>, vector<32x36xf32> -> vector<32x36xf32>
    %111 = arith.addf %103, %110 : vector<32x36xf32>
    %c7 = arith.constant 7 : index
    %c0_98 = arith.constant 0 : index
    %c0_99 = arith.constant 0 : index
    %112 = vector.load %arg7[%c7, %c0_98, %c0_99] : memref<9x64x36xbf16, #tpu.memory_space<vmem>>, vector<1x64x36xbf16>
    %113 = vector.shape_cast %112 : vector<1x64x36xbf16> to vector<64x36xbf16>
    %cst_100 = arith.constant dense<0.000000e+00> : vector<16x36xf32>
    %114 = tpu.matmul %54, %113, %cst_100 {dimension_numbers = #tpu.dot_dimension_numbers<[1], [0], [0], [1], [0, 0, 1, 1], [], []>} : vector<16x64xbf16>, vector<64x36xbf16>, vector<16x36xf32> -> vector<16x36xf32>
    %c7_101 = arith.constant 7 : index
    %c0_102 = arith.constant 0 : index
    %c0_103 = arith.constant 0 : index
    %115 = vector.load %arg8[%c7_101, %c0_102, %c0_103] : memref<9x32x16xbf16, #tpu.memory_space<vmem>>, vector<1x32x16xbf16>
    %116 = vector.shape_cast %115 : vector<1x32x16xbf16> to vector<32x16xbf16>
    %117 = arith.truncf %114 : vector<16x36xf32> to vector<16x36xbf16>
    %cst_104 = arith.constant dense<0.000000e+00> : vector<32x36xf32>
    %118 = tpu.matmul %116, %117, %cst_104 {dimension_numbers = #tpu.dot_dimension_numbers<[1], [0], [0], [1], [0, 0, 1, 1], [], []>} : vector<32x16xbf16>, vector<16x36xbf16>, vector<32x36xf32> -> vector<32x36xf32>
    %119 = arith.addf %111, %118 : vector<32x36xf32>
    %c8 = arith.constant 8 : index
    %c0_105 = arith.constant 0 : index
    %c0_106 = arith.constant 0 : index
    %120 = vector.load %arg7[%c8, %c0_105, %c0_106] : memref<9x64x36xbf16, #tpu.memory_space<vmem>>, vector<1x64x36xbf16>
    %121 = vector.shape_cast %120 : vector<1x64x36xbf16> to vector<64x36xbf16>
    %cst_107 = arith.constant dense<0.000000e+00> : vector<16x36xf32>
    %122 = tpu.matmul %54, %121, %cst_107 {dimension_numbers = #tpu.dot_dimension_numbers<[1], [0], [0], [1], [0, 0, 1, 1], [], []>} : vector<16x64xbf16>, vector<64x36xbf16>, vector<16x36xf32> -> vector<16x36xf32>
    %c8_108 = arith.constant 8 : index
    %c0_109 = arith.constant 0 : index
    %c0_110 = arith.constant 0 : index
    %123 = vector.load %arg8[%c8_108, %c0_109, %c0_110] : memref<9x32x16xbf16, #tpu.memory_space<vmem>>, vector<1x32x16xbf16>
    %124 = vector.shape_cast %123 : vector<1x32x16xbf16> to vector<32x16xbf16>
    %125 = arith.truncf %122 : vector<16x36xf32> to vector<16x36xbf16>
    %cst_111 = arith.constant dense<0.000000e+00> : vector<32x36xf32>
    %126 = tpu.matmul %124, %125, %cst_111 {dimension_numbers = #tpu.dot_dimension_numbers<[1], [0], [0], [1], [0, 0, 1, 1], [], []>} : vector<32x16xbf16>, vector<16x36xbf16>, vector<32x36xf32> -> vector<32x36xf32>
    %127 = arith.addf %119, %126 : vector<32x36xf32>
    %c0_112 = arith.constant 0 : index
    %c0_113 = arith.constant 0 : index
    %128 = vector.load %arg9[%c0_112, %c0_113] : memref<32x2xf32, #tpu.memory_space<vmem>>, vector<32x1xf32>
    %129 = vector.broadcast %128 : vector<32x1xf32> to vector<32x36xf32>
    %130 = arith.mulf %127, %129 : vector<32x36xf32>
    %c0_114 = arith.constant 0 : index
    %c1_115 = arith.constant 1 : index
    %131 = vector.load %arg9[%c0_114, %c1_115] : memref<32x2xf32, #tpu.memory_space<vmem>>, vector<32x1xf32>
    %132 = vector.broadcast %131 : vector<32x1xf32> to vector<32x36xf32>
    %133 = arith.addf %130, %132 : vector<32x36xf32>
    %cst_116 = arith.constant 0.000000e+00 : f32
    %134 = vector.broadcast %cst_116 : f32 to vector<32x36xf32>
    %135 = arith.maximumf %133, %134 : vector<32x36xf32>
    %136 = arith.truncf %135 : vector<32x36xf32> to vector<32x36xbf16>
    %c0_117 = arith.constant 0 : index
    %c0_118 = arith.constant 0 : index
    %137 = vector.load %arg10[%c0_117, %c0_118] : memref<36x320xbf16, #tpu.memory_space<vmem>>, vector<36x320xbf16>
    %cst_119 = arith.constant dense<0.000000e+00> : vector<32x320xf32>
    %138 = tpu.matmul %136, %137, %cst_119 {dimension_numbers = #tpu.dot_dimension_numbers<[1], [0], [0], [1], [0, 0, 1, 1], [], []>} : vector<32x36xbf16>, vector<36x320xbf16>, vector<32x320xf32> -> vector<32x320xf32>
    %c0_120 = arith.constant 0 : index
    %c0_121 = arith.constant 0 : index
    %139 = vector.load %arg11[%c0_120, %c0_121] : memref<32x320xf32, #tpu.memory_space<vmem>>, vector<32x320xf32>
    %140 = arith.mulf %138, %139 : vector<32x320xf32>
    %cst_122 = arith.constant dense<0.000000e+00> : vector<320xf32>
    %141 = vector.multi_reduction <add>, %140, %cst_122 [0] : vector<32x320xf32> to vector<320xf32>
    %142 = vector.shape_cast %141 : vector<320xf32> to vector<1x320xf32>
    %c0_123 = arith.constant 0 : index
    %c0_124 = arith.constant 0 : index
    %143 = vector.load %arg12[%c0_123, %c0_124] : memref<320x10xf32, #tpu.memory_space<vmem>>, vector<320x10xf32>
    %cst_125 = arith.constant dense<0.000000e+00> : vector<1x10xf32>
    %144 = tpu.matmul %142, %143, %cst_125 {dimension_numbers = #tpu.dot_dimension_numbers<[1], [0], [0], [1], [0, 0, 1, 1], [], []>} : vector<1x320xf32>, vector<320x10xf32>, vector<1x10xf32> -> vector<1x10xf32>
    %c0_126 = arith.constant 0 : index
    %c0_127 = arith.constant 0 : index
    %c0_128 = arith.constant 0 : index
    %145 = vector.load %arg13[%c0_126, %c0_127, %c0_128] : memref<1x1x10xf32, #tpu.memory_space<vmem>>, vector<1x1x10xf32>
    %146 = vector.shape_cast %145 : vector<1x1x10xf32> to vector<1x10xf32>
    %147 = vector.shape_cast %144 : vector<1x10xf32> to vector<1x1x10xf32>
    tpu.vector_store %arg13[%c0_126, %c0_127, %c0_128], %147 {strides = array<i32>} : memref<1x1x10xf32, #tpu.memory_space<vmem>>, vector<1x1x10xf32>,
    return
  }
  func.func @transform_0(%arg0: i32) -> (i32, i32, i32) {
    %c0_i32 = arith.constant 0 : i32
    %c0_i32_0 = arith.constant 0 : i32
    %c0_i32_1 = arith.constant 0 : i32
    return %arg0, %c0_i32, %c0_i32_0 : i32, i32, i32
  }
  func.func @transform_1(%arg0: i32) -> (i32, i32) {
    %c0_i32 = arith.constant 0 : i32
    %c0_i32_0 = arith.constant 0 : i32
    %c0_i32_1 = arith.constant 0 : i32
    return %c0_i32, %c0_i32_0 : i32, i32
  }
  func.func @transform_2(%arg0: i32) -> (i32, i32) {
    %c0_i32 = arith.constant 0 : i32
    %c0_i32_0 = arith.constant 0 : i32
    %c0_i32_1 = arith.constant 0 : i32
    return %c0_i32, %c0_i32_0 : i32, i32
  }
  func.func @transform_3(%arg0: i32) -> (i32, i32, i32) {
    %c0_i32 = arith.constant 0 : i32
    %c0_i32_0 = arith.constant 0 : i32
    %c0_i32_1 = arith.constant 0 : i32
    %c0_i32_2 = arith.constant 0 : i32
    return %c0_i32, %c0_i32_0, %c0_i32_1 : i32, i32, i32
  }
  func.func @transform_4(%arg0: i32) -> (i32, i32, i32) {
    %c0_i32 = arith.constant 0 : i32
    %c0_i32_0 = arith.constant 0 : i32
    %c0_i32_1 = arith.constant 0 : i32
    %c0_i32_2 = arith.constant 0 : i32
    return %c0_i32, %c0_i32_0, %c0_i32_1 : i32, i32, i32
  }
  func.func @transform_5(%arg0: i32) -> (i32, i32) {
    %c0_i32 = arith.constant 0 : i32
    %c0_i32_0 = arith.constant 0 : i32
    %c0_i32_1 = arith.constant 0 : i32
    return %c0_i32, %c0_i32_0 : i32, i32
  }
  func.func @transform_6(%arg0: i32) -> (i32, i32, i32) {
    %c0_i32 = arith.constant 0 : i32
    %c0_i32_0 = arith.constant 0 : i32
    %c0_i32_1 = arith.constant 0 : i32
    %c0_i32_2 = arith.constant 0 : i32
    return %c0_i32, %c0_i32_0, %c0_i32_1 : i32, i32, i32
  }
  func.func @transform_7(%arg0: i32) -> (i32, i32, i32) {
    %c0_i32 = arith.constant 0 : i32
    %c0_i32_0 = arith.constant 0 : i32
    %c0_i32_1 = arith.constant 0 : i32
    %c0_i32_2 = arith.constant 0 : i32
    return %c0_i32, %c0_i32_0, %c0_i32_1 : i32, i32, i32
  }
  func.func @transform_8(%arg0: i32) -> (i32, i32) {
    %c0_i32 = arith.constant 0 : i32
    %c0_i32_0 = arith.constant 0 : i32
    %c0_i32_1 = arith.constant 0 : i32
    return %c0_i32, %c0_i32_0 : i32, i32
  }
  func.func @transform_9(%arg0: i32) -> (i32, i32) {
    %c0_i32 = arith.constant 0 : i32
    %c0_i32_0 = arith.constant 0 : i32
    %c0_i32_1 = arith.constant 0 : i32
    return %c0_i32, %c0_i32_0 : i32, i32
  }
  func.func @transform_10(%arg0: i32) -> (i32, i32) {
    %c0_i32 = arith.constant 0 : i32
    %c0_i32_0 = arith.constant 0 : i32
    %c0_i32_1 = arith.constant 0 : i32
    return %c0_i32, %c0_i32_0 : i32, i32
  }
  func.func @transform_11(%arg0: i32) -> (i32, i32) {
    %c0_i32 = arith.constant 0 : i32
    %c0_i32_0 = arith.constant 0 : i32
    %c0_i32_1 = arith.constant 0 : i32
    return %c0_i32, %c0_i32_0 : i32, i32
  }
  func.func @transform_12(%arg0: i32) -> (i32, i32, i32) {
    %c0_i32 = arith.constant 0 : i32
    %c0_i32_0 = arith.constant 0 : i32
    %c0_i32_1 = arith.constant 0 : i32
    return %arg0, %c0_i32, %c0_i32_0 : i32, i32, i32
  }
}

</mosaic_0001>

<bundles_post_ra>
// kernel: cnn_3layer_fc_forward.1
= control target key start
LH: loop header
LB: loop body
LE: loop exit
PB: predicated region body
PF: predicated region fallthrough
CT: control target
= control target key end

     0   :  { %s5360_s0 = inlined_call_operand.vmem [shape: bf16[2,27,256], index: 0, kind: input, shape index: {}]   ;;  %s5361_s1 = inlined_call_operand.vmem [shape: bf16[8,27], index: 1, kind: input, shape index: {}]   ;;  %s5362_s2 = inlined_call_operand.vmem [shape: f32[8,2], index: 2, kind: input, shape index: {}]   ;;  %s5363_s3 = inlined_call_operand.vmem [shape: bf16[4,256,64], index: 3, kind: input, shape index: {}]   ;;  %s5364_s4 = inlined_call_operand.vmem [shape: bf16[4,16,8], index: 4, kind: input, shape index: {}]   ;;  %s5365_s5 = inlined_call_operand.vmem [shape: f32[16,2], index: 5, kind: input, shape index: {}]   ;;  %s5366_s6 = inlined_call_operand.vmem [shape: bf16[9,64,36], index: 6, kind: input, shape index: {}]   ;;  %s5367_s7 = inlined_call_operand.vmem [shape: bf16[9,32,16], index: 7, kind: input, shape index: {}]   ;;  %s5368_s8 = inlined_call_operand.vmem [shape: f32[32,2], index: 8, kind: input, shape index: {}]   ;;  %s5369_s9 = inlined_call_operand.vmem [shape: bf16[36,320], index: 9, kind: input, shape index: {}]   ;;  %s5370_s10 = inlined_call_operand.vmem [shape: f32[32,320], index: 10, kind: input, shape index: {}]   ;;  %s5371_s11 = inlined_call_operand.vmem [shape: f32[320,10], index: 11, kind: input, shape index: {}]   ;;  %s5372_s12 = inlined_call_operand.hbm [shape: f32[2,1,10], index: 12, kind: output, shape index: {}]  }
   0x1   :  { %5373 = sst [smem:[#allocation5_spill]] %s5360_s0 }
   0x2   :  { %5374 = sst [smem:[#allocation6_spill]] %s5361_s1 }
   0x3   :  { %17 = vsyncpa [#allocation3], 0 }
   0x4   :  { %19 = vsyncpa [#allocation3 + $0x1], 0  ;;  %s4538_s21 = smov 0   ;;  %s4540_s22 = smov 0  }
   0x5   :  { %s4542_s23 = smov 0   ;;  %s4544_s24 = smov 0  }
   0x6 LB: > { %s4559_s25 = sadd.s32 4294967295, %s4464_s24   ;;  %s3306_s26 = sadd.s32 4294967294, %s4464_s24   ;;  %s4464_s24 = sphi %s4544_s24, %s5382_s24   ;;  %s4460_s23 = sphi %s4542_s23, %s5381_s23   ;;  %s4456_s22 = sphi %s4540_s22, %s5380_s22   ;;  %s4452_s21 = sphi %s4538_s21, %s5379_s21  }
   0x7   : > { %s4563_s27 = sadd.s32 1, %s4464_s24   ;;  %s289_s28 = sadd.s32 1, %s4460_s23 }
   0x8   : > { %s286_s29 = ssub.s32 %s4464_s24, %s4563_s27  ;;  %p299_p0 = scmp.ne.s32.totalorder %s4460_s23, %s4456_s22 }
   0x9   : > { %p287_p1 = scmp.eq.s32.totalorder %s286_s29, 0  ;;  %p300_p2 = scmp.eq.s32.totalorder %s4559_s25, 1 }
   0xa   : > { %p305_p3 = scmp.ne.s32.totalorder %s4456_s22, %s4452_s21  ;;  %p306_p4 = scmp.eq.s32.totalorder %s3306_s26, 1 }
   0xb   : > { %s4574_s30 = scalar_select %p287_p1, %s4460_s23, %s289_s28  }
   0xc   : > { %p4576_p5 = por %p300_p2, %p299_p0  ;;  %p4580_p6 = por %p306_p4, %p305_p3 }
   0xd   : > { %p3309_p7 = scmp.ge.s32.totalorder %s4464_s24, 1  ;;  %p365_p8 = scmp.lt.s32.totalorder %s4464_s24, 3 }
   0xf   : > { %p366_p9 = pnand %p3309_p7, %p365_p8 }
  0x10   : > { %p406_p10 = scmp.lt.s32.totalorder (!%p366_p9), %s4559_s25, 1  ;;  %vm439_vm0 = vcmask (!%p366_p9), 1044480   ;;  %v490_v0 = vld [vmem:[%s5362_s2] sm:$0xff] (!%p366_p9)  ;;  %v4466_v1 = vmov (!%p366_p9), 0   ;;  %vm440_vm1 = vcmask (!%p366_p9), 1045504   ;;  %v4467_v2 = vmov (!%p366_p9), 65535  }
  0x11   : > { %369 = sbr.rel (%p366_p9) target bundleno = 2470 (0x9a6), region = 68  ;;  %481 = vmatprep.mubr.bf16.mxu0 (!%p366_p9), %v4466_v1  ;;  %4253 = vset.pattern.permute.xlu0 (!%p366_p9), %v4466_v1  ;;  %v441_v3 = vsel (!%p366_p9), %vm439_vm0, 4294967295, %v4467_v2  ;;  %v4270_v4 = vld [vmem:[%s5363_s3 + $0x40] sm:$0xff] (!%p366_p9)   ;;  %s5377_s0 = sld [smem:[#allocation5_spill]] (!%p366_p9)  ;;  %v4468_v6 = vmov (!%p366_p9), 1   ;;  %v4604_v7 = vld [vmem:[%s5365_s5 + $0x8] sm:$0xff] (!%p366_p9) }
  0x12   : > { %493 = vperm.xlu0 (!%p366_p9), %4253, %v490_v0   ;;  %4255 = vset.pattern.permute.xlu1 (!%p366_p9), %v4466_v1  ;;  %v442_v9 = vsel (!%p366_p9), %vm440_vm1, %v441_v3, 0  ;;  %v4272_v12 = vld [vmem:[%s5363_s3] sm:$0xff] (!%p366_p9)   ;;  %s5378_s1 = sld [smem:[#allocation6_spill]] (!%p366_p9)  ;;  %v4274_v17 = vld [vmem:[%s5363_s3 + $0x48] sm:$0xff] (!%p366_p9)   ;;  %vm435_vm2 = vcmask (!%p366_p9), 220160   ;;  %v4278_v21 = vld [vmem:[%s5363_s3 + $0x50] sm:$0xff] (!%p366_p9)  }
  0x13   : > { %3687 = vmatprep.subr.bf16.mxu1 (!%p366_p9), %v4270_v4  ;;  %v4269_v15 = vld [vmem:[%s5363_s3 + $0xc0] sm:$0xff] (!%p366_p9)   ;;  %v4276_v19 = vld [vmem:[%s5363_s3 + $0x8] sm:$0xff] (!%p366_p9)   ;;  %v4280_v23 = vld [vmem:[%s5363_s3 + $0x10] sm:$0xff] (!%p366_p9)   ;;  %vm4470_vm3 = vmmov (!%p366_p9), 0   ;;  %vm861_vm4 = vcmask (!%p366_p9), 1043456   ;;  %vm857_vm5 = vcmask (!%p366_p9), 64512  }
  0x14   : > { %3688 = vmatpush3.bf16.msra.mxu1 (!%p366_p9), %v4272_v12  ;;  %v4271_v18 = vld [vmem:[%s5363_s3 + $0x80] sm:$0xff] (!%p366_p9)   ;;  %v4273_v20 = vld [vmem:[%s5363_s3 + $0xc8] sm:$0xff] (!%p366_p9)   ;;  %v4277_v24 = vld [vmem:[%s5363_s3 + $0xd0] sm:$0xff] (!%p366_p9)   ;;  %vm1471_vm6 = vcmask (!%p366_p9), 523264   ;;  %vm1611_vm7 = vcmask (!%p366_p9), 130048   ;;  %vm2886_vm8 = vcmask (!%p366_p9), 1041408  }
  0x15   : > { %3689 = vmatprep.subr.bf16.mxu1 (!%p366_p9), %v4274_v17  ;;  %v4275_v22 = vld [vmem:[%s5363_s3 + $0x88] sm:$0xff] (!%p366_p9)   ;;  %v4282_v25 = vld [vmem:[%s5363_s3 + $0x58] sm:$0xff] (!%p366_p9)   ;;  %v4279_v26 = vld [vmem:[%s5363_s3 + $0x90] sm:$0xff] (!%p366_p9)   ;;  %vm2879_vm9 = vcmask (!%p366_p9), 293888   ;;  %s3683_s15 = sshll.u32 (!%p366_p9), %s4559_s25, 4  ;;  %vm3236_vm10 = vcmask (!%p366_p9), 73728  }
  0x16   : > { %4254 = vset.pattern.permute.xlu0 (!%p366_p9), %v4468_v6  ;;  %v4284_v27 = vld [vmem:[%s5363_s3 + $0x18] sm:$0xff] (!%p366_p9)   ;;  %v4286_v29 = vld [vmem:[%s5363_s3 + $0x60] sm:$0xff] (!%p366_p9)   ;;  %v4290_v34 = vld [vmem:[%s5363_s3 + $0x68] sm:$0xff] (!%p366_p9)  }
  0x17   : > { %499 = vperm.xlu0 (!%p366_p9), %4254, %v490_v0   ;;  %v4281_v28 = vld [vmem:[%s5363_s3 + $0xd8] sm:$0xff] (!%p366_p9)   ;;  %v4288_v31 = vld [vmem:[%s5363_s3 + $0x20] sm:$0xff] (!%p366_p9)   ;;  %v4289_v35 = vld [vmem:[%s5363_s3 + $0xe8] sm:$0xff] (!%p366_p9)  }
  0x18   : > { %s407_s17 = scalar_select %p406_p10, %s4559_s25, 1  ;;  %v412_v16 = vld [vmem:[%s5378_s1] sm:$0xf]  ;;  %3690 = vmatpush3.bf16.msra.mxu1 %v4276_v19  ;;  %v4283_v30 = vld [vmem:[%s5363_s3 + $0x98] sm:$0xff]   ;;  %v4291_v36 = vld [vmem:[%s5363_s3 + $0xa8] sm:$0xff]  }
  0x19   : > { %3691 = vmatprep.subr.bf16.mxu1 %v4278_v21  ;;  %v4285_v32 = vld [vmem:[%s5363_s3 + $0xe0] sm:$0xff]   ;;  %v4292_v37 = vld [vmem:[%s5363_s3 + $0x28] sm:$0xff]   ;;  %v4293_v38 = vld [vmem:[%s5363_s3 + $0xf0] sm:$0xff]   ;;  %s4472_s25 = smov [#allocation2]  }
  0x1a   : > { %s3686_s18 = sshll.u32 %s407_s17, 5  ;;  %v4287_v33 = vld [vmem:[%s5363_s3 + $0xa0] sm:$0xff]   ;;  %v4294_v39 = vld [vmem:[%s5363_s3 + $0x70] sm:$0xff]   ;;  %v4297_v42 = vld [vmem:[%s5363_s3 + $0xf8] sm:$0xff]   ;;  %s4406_s28 = sshll.u32 %s4472_s25, 4  ;;  %s4407_s28 = int_to_ptr.vmem [resolvable:$false] %s4406_s28 }
  0x1b   : > { %s410_s29 = scalar_lea.vmem %s5377_s0, %s3686_s18  ;;  %1431 = vperm.xlu0 %4254, %v4604_v7   ;;  %v4295_v40 = vld [vmem:[%s5363_s3 + $0xb0] sm:$0xff]   ;;  %v4298_v43 = vld [vmem:[%s5363_s3 + $0x78] sm:$0xff]   ;;  %v4301_v46 = vld [vmem:[%s5363_s3 + $0x140] sm:$0xff]   ;;  %s404_s0 = sand.u32 1, %s4456_s22  }
  0x1c   : > { %v4263_v5 = vld [vmem:[%s410_s29 + $0x4] ss:$8 sps:$4 sm:$0xff]   ;;  %v4265_v8 = vld [vmem:[%s410_s29] ss:$8 sps:$4 sm:$0xff]   ;;  %3692 = vmatpush3.bf16.msra.mxu1 %v4280_v23  ;;  %v4296_v41 = vld [vmem:[%s5363_s3 + $0x30] sm:$0xff]   ;;  %s5318_s18 = scalar_lea.hbm %s5372_s12, %s3683_s15  ;;  %s3239_s20 = scalar_lea.sflag [#allocation3], %s404_s0 }
  0x1d   : > { %449 = vmatprep.subr.bf16.mxu0 %v4263_v5  ;;  %v4266_v10 = vld [vmem:[%s410_s29 + $0x14] ss:$8 sps:$4 sm:$0x3f]   ;;  %v4268_v11 = vld [vmem:[%s410_s29 + $0x10] ss:$8 sps:$4 sm:$0x3f]   ;;  %3693 = vmatprep.subr.bf16.mxu1 %v4282_v25 }
  0x1e   : > { %450 = vmatpush1.bf16.msra.mxu0 %v4265_v8  ;;  %v447_v13 = vand.u32 %v4266_v10, %v442_v9  ;;  %v444_v14 = vand.u32 %v4268_v11, %v442_v9  ;;  %v4299_v44 = vld [vmem:[%s5363_s3 + $0xb8] sm:$0xff]   ;;  %v4302_v60 = vld [vmem:[%s5363_s3 + $0x100] sm:$0xff]   ;;  %v4303_v62 = vld [vmem:[%s5363_s3 + $0x148] sm:$0xff]   ;;  %s405_s29 = scalar_lea.vmem [#allocation2], %s404_s0  ;;  %s4408_s1 = scalar_lea.vmem %s4407_s28, 32 }
  0x1f   : > { %4258 = vset.pattern.permute.xlu0 %v4466_v1  ;;  %v4300_v45 = vld [vmem:[%s5363_s3 + $0x38] sm:$0xff]   ;;  %v4304_v63 = vld [vmem:[%s5363_s3 + $0x108] sm:$0xff]   ;;  %v4305_v0 = vld [vmem:[%s5363_s3 + $0x150] sm:$0xff]   ;;  %s3251_s16 = sshll.u32 %s405_s29, 4  ;;  %s5320_s16 = int_to_ptr.vmem [resolvable:$true] %s3251_s16 }
  0x20   : > { %451 = vmatprep.subr.bf16.mxu0 %v447_v13  ;;  %3694 = vmatpush3.bf16.msra.mxu1 %v4284_v27  ;;  %v4306_v2 = vld [vmem:[%s5363_s3 + $0x110] sm:$0xff]   ;;  %v4307_v3 = vld [vmem:[%s5363_s3 + $0x158] sm:$0xff]   ;;  %v4309_v5 = vld [vmem:[%s5363_s3 + $0x160] sm:$0xff]   ;;  %s4402_s26 = scalar_lea.vmem %s5320_s16, 16  ;;  %p4409_p0 = scmp.lt.s32.totalorder %s5320_s16, %s4407_s28 }
  0x21   : > { %3695 = vmatprep.subr.bf16.mxu1 %v4286_v29  ;;  %v4308_v4 = vld [vmem:[%s5363_s3 + $0x118] sm:$0xff]   ;;  %v4310_v8 = vld [vmem:[%s5363_s3 + $0x120] sm:$0xff]   ;;  %v4311_v9 = vld [vmem:[%s5363_s3 + $0x168] sm:$0xff]   ;;  %p4403_p11 = scmp.ne.s32.totalorder %s5320_s16, %s4402_s26  ;;  %p4410_p1 = scmp.lt.s32.totalorder %s4408_s1, %s4402_s26 }
  0x22   : > { %452 = vmatpush1.bf16.msra.mxu0 %v444_v14  ;;  %v4312_v10 = vld [vmem:[%s5363_s3 + $0x128] sm:$0xff]   ;;  %v4313_v11 = vld [vmem:[%s5363_s3 + $0x170] sm:$0xff]   ;;  %v4315_v13 = vld [vmem:[%s5363_s3 + $0x178] sm:$0xff]  }
  0x23   : > { %3709 = vmatprep.subr.bf16.mxu0 %v4269_v15  ;;  %v4314_v12 = vld [vmem:[%s5363_s3 + $0x130] sm:$0xff]   ;;  %v4316_v14 = vld [vmem:[%s5363_s3 + $0x138] sm:$0xff]   ;;  %v4469_v15 = vmov 0.0   ;;  %v4317_v29 = vld [vmem:[%s5364_s4 + $0x8] sm:$0xff]   ;;  %p4404_p12 = pnand %p4403_p11, %p4576_p5  ;;  %p4411_p2 = por %p4410_p1, %p4409_p0 }
  0x24   : > { %3696 = vmatpush3.bf16.msra.mxu1 %v4288_v31  ;;  %v4318_v31 = vld [vmem:[%s5364_s4] sm:$0xff]  }
  0x25   : > { %3316 = vmatmul.mubr.msk.bf16.vlgmr.msra.gmra.mrb[0].mxu0 %vm435_vm2, %v412_v16  ;;  %3697 = vmatprep.subr.bf16.mxu1 %v4290_v34  ;;  %p4405_p13 = pneg %p4404_p12 }
  0x26   : > { %3710 = vmatpush3.bf16.msra.mxu0 %v4271_v18 }
  0x27   : > { %3711 = vmatprep.subr.bf16.mxu0 %v4273_v20  ;;  %p4412_p3 = pnand %p4411_p2, %p4405_p13 }
  0x28   : > { %3698 = vmatpush3.bf16.msra.mxu1 %v4292_v37 }
  0x29   : > { %3699 = vmatprep.subr.bf16.mxu1 %v4294_v39 }
  0x2a   : > { %3712 = vmatpush3.bf16.msra.mxu0 %v4275_v22 }
  0x2b   : > { %3713 = vmatprep.subr.bf16.mxu0 %v4277_v24 }
  0x2c   : > { %3700 = vmatpush3.bf16.msra.mxu1 %v4296_v41  ;;  %v4321_v41 = vld [vmem:[%s5363_s3 + $0x180] sm:$0xff]  }
  0x2d   : > { %3701 = vmatprep.subr.bf16.mxu1 %v4298_v43  ;;  %v4323_v43 = vld [vmem:[%s5363_s3 + $0x188] sm:$0xff]  }
  0x2e   : > { %3714 = vmatpush3.bf16.msra.mxu0 %v4279_v26 }
  0x2f   : > { %3715 = vmatprep.subr.bf16.mxu0 %v4281_v28 }
  0x30   : > { %3702 = vmatpush3.bf16.msra.mxu1 %v4300_v45  ;;  %v4325_v45 = vld [vmem:[%s5363_s3 + $0x190] sm:$0xff]  }
  0x31   : > { %3904 = vmatprep.subr.bf16.mxu1 %v4469_v15 }
  0x32   : > { %3716 = vmatpush3.bf16.msra.mxu0 %v4283_v30 }
  0x33   : > { %3717 = vmatprep.subr.bf16.mxu0 %v4285_v32 }
  0x36   : > { %3718 = vmatpush3.bf16.msra.mxu0 %v4287_v33 }
  0x37   : > { %3719 = vmatprep.subr.bf16.mxu0 %v4289_v35 }
  0x3a   : > { %3720 = vmatpush3.bf16.msra.mxu0 %v4291_v36 }
  0x3b   : > { %3721 = vmatprep.subr.bf16.mxu0 %v4293_v38  ;;  %v4320_v38 = vld [vmem:[%s5363_s3 + $0x1c0] sm:$0xff]  }
  0x3e   : > { %3722 = vmatpush3.bf16.msra.mxu0 %v4295_v40  ;;  %v4319_v40 = vld [vmem:[%s5364_s4 + $0x10] sm:$0xff]  }
  0x3f   : > { %3723 = vmatprep.subr.bf16.mxu0 %v4297_v42  ;;  %v4322_v42 = vld [vmem:[%s5363_s3 + $0x1c8] sm:$0xff]  }
  0x42   : > { %3724 = vmatpush3.bf16.msra.mxu0 %v4299_v44  ;;  %v4324_v44 = vld [vmem:[%s5363_s3 + $0x1d0] sm:$0xff]  }
  0x43   : > { %3735 = vmatprep.subr.bf16.mxu0 %v4301_v46  ;;  %v4326_v46 = vld [vmem:[%s5363_s3 + $0x1d8] sm:$0xff]  }
  0x91   : > { %v494_v47 = vpop.permute.xlu0 %493 }
  0x96   : > { %v500_v51 = vpop.permute.xlu0 %499 }
  0xf8   : > { %v483_v48 = vpop.f32.mrb[0].mxu0 }
  0xf9   : > { %v496_v49 = vmul.f32 %v494_v47, %v483_v48  ;;  %v485_v50 = vpop.f32.mrb[1].mxu0  ;;  %v4328_v48 = vld [vmem:[%s5363_s3 + $0x1e0] sm:$0xff]  }
  0xfa   : > { %v497_v52 = vmul.f32 %v494_v47, %v485_v50  ;;  %v487_v53 = vpop.f32.mrb[2].mxu0  ;;  %v4327_v47 = vld [vmem:[%s5363_s3 + $0x198] sm:$0xff]   ;;  %v4330_v50 = vld [vmem:[%s5363_s3 + $0x1e8] sm:$0xff]  }
  0xfb   : > { %v502_v54 = vadd.f32 %v500_v51, %v496_v49  ;;  %v488_v55 = vpop.f32.mrb[3].mxu0  ;;  %v4329_v49 = vld [vmem:[%s5363_s3 + $0x1a0] sm:$0xff]   ;;  %v4333_v53 = vld [vmem:[%s5363_s3 + $0x1b0] sm:$0xff]  }
  0xfc   : > { %v503_v56 = vadd.f32 %v500_v51, %v497_v52  ;;  %v4331_v51 = vld [vmem:[%s5363_s3 + $0x1a8] sm:$0xff]   ;;  %v4332_v52 = vld [vmem:[%s5363_s3 + $0x1f0] sm:$0xff]   ;;  %v4335_v55 = vld [vmem:[%s5363_s3 + $0x1b8] sm:$0xff]  }
  0xfd   : > { %v504_v57 = vmax.f32 %v502_v54, 0.0  ;;  %v4334_v54 = vld [vmem:[%s5363_s3 + $0x1f8] sm:$0xff]  }
  0xfe   : > { %v505_v58 = vmax.f32 %v503_v56, 0.0  ;;  %v1412_v56 = vld [vmem:[%s5365_s5] sm:$0xff] }
  0xff   : > { %v4712_v61 = vpack.c.bf16 %v504_v57, %v504_v57  ;;  %v4337_v57 = vld [vmem:[%s5366_s6] sm:$0xff]   ;;  %1416 = vperm.xlu1 %4255, %v1412_v56  }
 0x100   : > { %v4707_v59 = vpack.c.bf16 %v505_v58, %v505_v58  ;;  %v4338_v58 = vld [vmem:[%s5366_s6 + $0x8] sm:$0xff]  }
 0x102   : > { %668 = vmatprep.mubr.bf16.mxu1 %v4707_v59  ;;  %840 = vmatprep.mubr.bf16.mxu0 %v4707_v59 }
 0x103   : > { %669 = vmatmul.mubr.bf16.vlgmr.msra.gmra.mrb[0].mxu1 %v4712_v61  ;;  %841 = vmatmul.mubr.bf16.vlgmr.msra.gmra.mrb[4].mxu0 %v4712_v61 }
 0x104   : > { %3736 = vmatpush3.bf16.msra.mxu0 %v4302_v60  ;;  %1119 = vmatprep.mubr.bf16.mxu0 %v4707_v59 }
 0x105   : > { %3737 = vmatprep.subr.bf16.mxu0 %v4303_v62  ;;  %3906 = vmatprep.mubr.msk.bf16.mxu1 %vm4470_vm3, %v4469_v15 }
 0x106   : > { %1421 = vperm.xlu1 %4255, %v4604_v7   ;;  %v4336_v7 = vld [vmem:[%s5364_s4 + $0x18] sm:$0xff]  }
 0x108   : > { %3738 = vmatpush3.bf16.msra.mxu0 %v4304_v63 }
 0x109   : > { %3739 = vmatprep.subr.bf16.mxu0 %v4305_v0 }
 0x10a   : > { %4256 = vset.pattern.permute.xlu1 %v4468_v6 }
 0x10b   : > { %1427 = vperm.xlu1 %4256, %v1412_v56  }
 0x10c   : > { %3740 = vmatpush3.bf16.msra.mxu0 %v4306_v2 }
 0x10d   : > { %3741 = vmatprep.subr.bf16.mxu0 %v4307_v3  ;;  %v4339_v3 = vld [vmem:[%s5366_s6 + $0x10] sm:$0xff]  }
 0x10f   : > { %4257 = vset.pattern.permute.xlu1 %v4466_v1 }
 0x110   : > { %3742 = vmatpush3.bf16.msra.mxu0 %v4308_v4  ;;  %v4340_v4 = vld [vmem:[%s5366_s6 + $0x18] sm:$0xff]  }
 0x111   : > { %3743 = vmatprep.subr.bf16.mxu0 %v4309_v5 }
 0x114   : > { %3744 = vmatpush3.bf16.msra.mxu0 %v4310_v8 }
 0x115   : > { %3745 = vmatprep.subr.bf16.mxu0 %v4311_v9 }
 0x118   : > { %3746 = vmatpush3.bf16.msra.mxu0 %v4312_v10 }
 0x119   : > { %3747 = vmatprep.subr.bf16.mxu0 %v4313_v11 }
 0x11c   : > { %3748 = vmatpush3.bf16.msra.mxu0 %v4314_v12 }
 0x11d   : > { %3749 = vmatprep.subr.bf16.mxu0 %v4315_v13 }
 0x120   : > { %3750 = vmatpush3.bf16.msra.mxu0 %v4316_v14 }
 0x121   : > { %3928 = vmatprep.subr.bf16.mxu0 %v4469_v15 }
 0x123   : > { %1120 = vmatmul.mubr.bf16.vlgmr.msra.gmra.mrb[8].mxu0 %v4712_v61 }
 0x124   : > { %3936 = vmatprep.mubr.msk.bf16.mxu0 %vm4470_vm3, %v4469_v15  ;;  %3929 = vmatpush3.bf16.msra.mxu0 %v4337_v57 }
 0x125   : > { %3930 = vmatprep.subr.bf16.mxu0 %v4469_v15 }
 0x128   : > { %3931 = vmatpush3.bf16.msra.mxu0 %v4338_v58  ;;  %v4366_v58 = vld [vmem:[%s5367_s7 + $0x18] sm:$0xff]  }
 0x129   : > { %3932 = vmatprep.subr.bf16.mxu0 %v4469_v15 }
 0x12c   : > { %3933 = vmatpush3.bf16.msra.mxu0 %v4339_v3  ;;  %v4370_v3 = vld [vmem:[%s5367_s7 + $0x28] sm:$0xff]  }
 0x12d   : > { %3934 = vmatprep.subr.bf16.mxu0 %v4469_v15 }
 0x130   : > { %3935 = vmatpush3.bf16.msra.mxu0 %v4340_v4  ;;  %v4371_v4 = vld [vmem:[%s5367_s7 + $0x30] sm:$0xff]  }
 0x131   : > { %3940 = vmatprep.subr.bf16.mxu0 %v4469_v15 }
 0x17e   : > { %v1417_v5 = vpop.permute.xlu1 %1416 }
 0x185   : > { %v1422_v8 = vpop.permute.xlu1 %1421 }
 0x18a   : > { %v1428_v10 = vpop.permute.xlu1 %1427 }
 0x1d6   : > { %v3703_v16 = vpop.f32.mrb[0].mxu1  ;;  %v3725_v17 = vpop.f32.mrb[4].mxu0 }
 0x1d7   : > { %v3704_v18 = vpop.f32.mrb[1].mxu1  ;;  %v3726_v19 = vpop.f32.mrb[5].mxu0 }
 0x1d8   : > { %v3705_v20 = vadd.f32 %v3704_v18, %v3703_v16  ;;  %v3727_v21 = vadd.f32 %v3726_v19, %v3725_v17  ;;  %v3706_v22 = vpop.f32.mrb[2].mxu1  ;;  %v3728_v23 = vpop.f32.mrb[6].mxu0 }
 0x1d9   : > { %v3707_v24 = vpop.f32.mrb[3].mxu1  ;;  %v3729_v25 = vpop.f32.mrb[7].mxu0  ;;  %v4341_v22 = vld [vmem:[%s5366_s6 + $0x20] sm:$0xff]  }
 0x1da   : > { %v851_v26 = vpack.c.bf16 %v3727_v21, %v3727_v21  ;;  %v678_v27 = vpack.c.bf16 %v3705_v20, %v3705_v20  ;;  %v1432_v18 = vpop.permute.xlu0 %1431  ;;  %v4342_v24 = vld [vmem:[%s5366_s6 + $0x28] sm:$0xff]   ;;  %v4343_v25 = vld [vmem:[%s5366_s6 + $0x30] sm:$0xff]  }
 0x1dc   : > { %v863_v28 = vsel %vm861_vm4, %v851_v26, 0  ;;  %v915_v30 = vsel %vm861_vm4, %v678_v27, 0  ;;  %v4344_v26 = vld [vmem:[%s5366_s6 + $0x38] sm:$0xff]   ;;  %v4345_v27 = vld [vmem:[%s5366_s6 + $0x40] sm:$0xff]  }
 0x1dd   : > { %3905 = vmatpush3.bf16.msra.mxu1 %v863_v28  ;;  %v4346_v28 = vld [vmem:[%s5366_s6 + $0x48] sm:$0xff]  }
 0x1de   : > { %3910 = vmatprep.subr.bf16.mxu1 %v4469_v15 }
 0x1e0   : > { %3907 = vmatmul.mubr.msk.bf16.vlgmr.msra.gmra.mrb[4].mxu1 %vm857_vm5, %v4317_v29  ;;  %v4347_v29 = vld [vmem:[%s5366_s6 + $0x50] sm:$0xff]  }
 0x1e1   : > { %3911 = vmatpush3.bf16.msra.mxu1 %v915_v30  ;;  %3912 = vmatprep.mubr.msk.bf16.mxu1 %vm4470_vm3, %v4469_v15  ;;  %v4348_v30 = vld [vmem:[%s5366_s6 + $0x58] sm:$0xff]  }
 0x1e2   : > { %3916 = vmatprep.subr.bf16.mxu1 %v4469_v15 }
 0x1ec   : > { %3913 = vmatmul.mubr.msk.bf16.vlgmr.msra.gmra.mrb[4].mxu1 %vm857_vm5, %v4318_v31  ;;  %v4349_v31 = vld [vmem:[%s5366_s6 + $0x60] sm:$0xff]  }
 0x1ed   : > { %3918 = vmatprep.mubr.msk.bf16.mxu1 %vm4470_vm3, %v4469_v15 }
 0x1f6   : > { %v3751_v32 = vpop.f32.mrb[8].mxu0 }
 0x1f7   : > { %v3752_v33 = vpop.f32.mrb[9].mxu0 }
 0x1f8   : > { %v3753_v34 = vadd.f32 %v3752_v33, %v3751_v32  ;;  %v3754_v35 = vpop.f32.mrb[10].mxu0  ;;  %v4350_v32 = vld [vmem:[%s5366_s6 + $0x68] sm:$0xff]   ;;  %v4351_v33 = vld [vmem:[%s5366_s6 + $0x70] sm:$0xff]  }
 0x1f9   : > { %v3755_v36 = vpop.f32.mrb[11].mxu0  ;;  %v4353_v35 = vld [vmem:[%s5366_s6 + $0xa0] sm:$0xff]  }
 0x1fa   : > { %v1130_v37 = vpack.c.bf16 %v3753_v34, %v3753_v34  ;;  %v4352_v34 = vld [vmem:[%s5366_s6 + $0x78] sm:$0xff]   ;;  %v4354_v36 = vld [vmem:[%s5366_s6 + $0xa8] sm:$0xff]  }
 0x1fc   : > { %v1140_v39 = vsel %vm861_vm4, %v1130_v37, 0  ;;  %v4355_v37 = vld [vmem:[%s5366_s6 + $0xb0] sm:$0xff]  }
 0x1fd   : > { %3917 = vmatpush3.bf16.msra.mxu1 %v1140_v39  ;;  %v4357_v39 = vld [vmem:[%s5366_s6 + $0xc0] sm:$0xff]  }
 0x1fe   : > { %3759 = vmatprep.subr.bf16.mxu1 %v4320_v38  ;;  %v4356_v38 = vld [vmem:[%s5366_s6 + $0xb8] sm:$0xff]  }
 0x200   : > { %3919 = vmatmul.mubr.msk.bf16.vlgmr.msra.gmra.mrb[4].mxu1 %vm857_vm5, %v4319_v40  ;;  %v4358_v40 = vld [vmem:[%s5366_s6 + $0xc8] sm:$0xff]  }
 0x201   : > { %3760 = vmatpush3.bf16.msra.mxu1 %v4321_v41  ;;  %1346 = vmatprep.mubr.bf16.mxu1 %v4707_v59  ;;  %v4359_v41 = vld [vmem:[%s5366_s6 + $0xd0] sm:$0xff]  }
 0x202   : > { %3761 = vmatprep.subr.bf16.mxu1 %v4322_v42  ;;  %v4360_v42 = vld [vmem:[%s5366_s6 + $0xd8] sm:$0xff]  }
 0x205   : > { %3762 = vmatpush3.bf16.msra.mxu1 %v4323_v43  ;;  %v4361_v43 = vld [vmem:[%s5366_s6 + $0xe0] sm:$0xff]  }
 0x206   : > { %3763 = vmatprep.subr.bf16.mxu1 %v4324_v44  ;;  %v4362_v44 = vld [vmem:[%s5366_s6 + $0xe8] sm:$0xff]  }
 0x209   : > { %3764 = vmatpush3.bf16.msra.mxu1 %v4325_v45  ;;  %v4363_v45 = vld [vmem:[%s5366_s6 + $0xf0] sm:$0xff]  }
 0x20a   : > { %3765 = vmatprep.subr.bf16.mxu1 %v4326_v46  ;;  %v4364_v46 = vld [vmem:[%s5366_s6 + $0xf8] sm:$0xff]  }
 0x20d   : > { %3766 = vmatpush3.bf16.msra.mxu1 %v4327_v47  ;;  %v4365_v47 = vld [vmem:[%s5367_s7 + $0x10] sm:$0xff]  }
 0x20e   : > { %3767 = vmatprep.subr.bf16.mxu1 %v4328_v48 }
 0x211   : > { %3768 = vmatpush3.bf16.msra.mxu1 %v4329_v49 }
 0x212   : > { %3769 = vmatprep.subr.bf16.mxu1 %v4330_v50 }
 0x215   : > { %3770 = vmatpush3.bf16.msra.mxu1 %v4331_v51 }
 0x216   : > { %3771 = vmatprep.subr.bf16.mxu1 %v4332_v52 }
 0x219   : > { %3772 = vmatpush3.bf16.msra.mxu1 %v4333_v53 }
 0x21a   : > { %3773 = vmatprep.subr.bf16.mxu1 %v4334_v54 }
 0x21d   : > { %3774 = vmatpush3.bf16.msra.mxu1 %v4335_v55 }
 0x21e   : > { %3922 = vmatprep.subr.bf16.mxu1 %v4469_v15 }
 0x220   : > { %1347 = vmatmul.mubr.bf16.vlgmr.msra.gmra.mrb[8].mxu1 %v4712_v61 }
 0x221   : > { %3924 = vmatprep.mubr.msk.bf16.mxu1 %vm4470_vm3, %v4469_v15 }
 0x2f3   : > { %v3775_v59 = vpop.f32.mrb[8].mxu1 }
 0x2f4   : > { %v3776_v60 = vpop.f32.mrb[9].mxu1 }
 0x2f5   : > { %v3777_v61 = vadd.f32 %v3776_v60, %v3775_v59  ;;  %v3778_v62 = vpop.f32.mrb[10].mxu1  ;;  %v4367_v59 = vld [vmem:[%s5367_s7] sm:$0xff]  }
 0x2f6   : > { %v3779_v63 = vpop.f32.mrb[11].mxu1  ;;  %v4368_v62 = vld [vmem:[%s5367_s7 + $0x8] sm:$0xff]  }
 0x2f7   : > { %v1357_v0 = vpack.c.bf16 %v3777_v61, %v3777_v61 }
 0x2f9   : > { %v1367_v2 = vsel %vm861_vm4, %v1357_v0, 0  ;;  %v4369_v0 = vld [vmem:[%s5367_s7 + $0x20] sm:$0xff]  }
 0x2fa   : > { %3923 = vmatpush3.bf16.msra.mxu1 %v1367_v2 }
 0x2fd   : > { %3925 = vmatmul.mubr.msk.bf16.vlgmr.msra.gmra.mrb[4].mxu1 %vm857_vm5, %v4336_v7 }
 0x2fe   : > { %3954 = vmatprep.mubr.msk.bf16.mxu1 %vm1611_vm7, %v4365_v47  ;;  %v4385_v47 = vld [vmem:[%s5366_s6 + $0x100] sm:$0xff]  }
 0x3d0   : > { %v1403_v9 = vpop.f32.mrb[4].mxu1 }
 0x3d1   : > { %v1424_v11 = vmul.f32 %v1417_v5, %v1403_v9  ;;  %v3926_v12 = vpop.f32.mrb[5].mxu1 }
 0x3d2   : > { %v1406_v13 = vpop.f32.mrb[6].mxu1  ;;  %v4372_v12 = vld [vmem:[%s5367_s7 + $0x38] sm:$0xff]  }
 0x3d3   : > { %v1434_v14 = vadd.f32 %v1428_v10, %v1424_v11  ;;  %v1425_v16 = vmul.f32 %v1422_v8, %v1406_v13  ;;  %v3927_v17 = vpop.f32.mrb[7].mxu1  ;;  %v4373_v13 = vld [vmem:[%s5366_s6 + $0x80] sm:$0xff]  }
 0x3d5   : > { %v1435_v19 = vadd.f32 %v1432_v18, %v1425_v16  ;;  %v1436_v20 = vmax.f32 %v1434_v14, 0.0  ;;  %v4374_v14 = vld [vmem:[%s5366_s6 + $0x88] sm:$0xff]  }
 0x3d7   : > { %v1437_v21 = vmax.f32 %v1435_v19, 0.0  ;;  %v4375_v19 = vld [vmem:[%s5366_s6 + $0x90] sm:$0xff]  }
 0x3d9   : > { %v4872_v23 = vpack.c.bf16 %v1437_v21, %v1436_v20 }
 0x3db   : > { %3937 = vmatmul.mubr.msk.bf16.vlgmr.msra.gmra.mrb[12].mxu0 %vm1471_vm6, %v4872_v23 }
 0x3dc   : > { %3941 = vmatpush3.bf16.msra.mxu0 %v4341_v22  ;;  %3948 = vmatprep.mubr.msk.bf16.mxu0 %vm4470_vm3, %v4469_v15  ;;  %v4376_v22 = vld [vmem:[%s5366_s6 + $0x98] sm:$0xff]  }
 0x3dd   : > { %3942 = vmatprep.subr.bf16.mxu0 %v4469_v15 }
 0x3e0   : > { %3943 = vmatpush3.bf16.msra.mxu0 %v4342_v24 }
 0x3e1   : > { %3944 = vmatprep.subr.bf16.mxu0 %v4469_v15 }
 0x3e4   : > { %3945 = vmatpush3.bf16.msra.mxu0 %v4343_v25 }
 0x3e5   : > { %3946 = vmatprep.subr.bf16.mxu0 %v4469_v15 }
 0x3e8   : > { %3947 = vmatpush3.bf16.msra.mxu0 %v4344_v26 }
 0x3e9   : > { %3964 = vmatprep.subr.bf16.mxu0 %v4469_v15 }
 0x3eb   : > { %3949 = vmatmul.mubr.msk.bf16.vlgmr.msra.gmra.mrb[16].mxu0 %vm1471_vm6, %v4872_v23 }
 0x3ec   : > { %3965 = vmatpush3.bf16.msra.mxu0 %v4345_v27  ;;  %3972 = vmatprep.mubr.msk.bf16.mxu0 %vm4470_vm3, %v4469_v15 }
 0x3ed   : > { %3966 = vmatprep.subr.bf16.mxu0 %v4469_v15 }
 0x3f0   : > { %3967 = vmatpush3.bf16.msra.mxu0 %v4346_v28 }
 0x3f1   : > { %3968 = vmatprep.subr.bf16.mxu0 %v4469_v15 }
 0x3f4   : > { %3969 = vmatpush3.bf16.msra.mxu0 %v4347_v29 }
 0x3f5   : > { %3970 = vmatprep.subr.bf16.mxu0 %v4469_v15 }
 0x3f8   : > { %3971 = vmatpush3.bf16.msra.mxu0 %v4348_v30 }
 0x3f9   : > { %3982 = vmatprep.subr.bf16.mxu0 %v4469_v15 }
 0x3fb   : > { %3973 = vmatmul.mubr.msk.bf16.vlgmr.msra.gmra.mrb[20].mxu0 %vm1471_vm6, %v4872_v23 }
 0x3fc   : > { %3983 = vmatpush3.bf16.msra.mxu0 %v4349_v31  ;;  %3990 = vmatprep.mubr.msk.bf16.mxu0 %vm4470_vm3, %v4469_v15 }
 0x3fd   : > { %3984 = vmatprep.subr.bf16.mxu0 %v4469_v15 }
 0x400   : > { %3985 = vmatpush3.bf16.msra.mxu0 %v4350_v32 }
 0x401   : > { %3986 = vmatprep.subr.bf16.mxu0 %v4469_v15 }
 0x404   : > { %3987 = vmatpush3.bf16.msra.mxu0 %v4351_v33 }
 0x405   : > { %3988 = vmatprep.subr.bf16.mxu0 %v4469_v15 }
 0x408   : > { %3989 = vmatpush3.bf16.msra.mxu0 %v4352_v34  ;;  %v4377_v34 = vld [vmem:[%s5367_s7 + $0x40] sm:$0xff]  }
 0x409   : > { %4018 = vmatprep.subr.bf16.mxu0 %v4469_v15 }
 0x40b   : > { %3991 = vmatmul.mubr.msk.bf16.vlgmr.msra.gmra.mrb[24].mxu0 %vm1471_vm6, %v4872_v23 }
 0x40c   : > { %4019 = vmatpush3.bf16.msra.mxu0 %v4353_v35  ;;  %4026 = vmatprep.mubr.msk.bf16.mxu0 %vm4470_vm3, %v4469_v15 }
 0x40d   : > { %4020 = vmatprep.subr.bf16.mxu0 %v4469_v15 }
 0x410   : > { %4021 = vmatpush3.bf16.msra.mxu0 %v4354_v36 }
 0x411   : > { %4022 = vmatprep.subr.bf16.mxu0 %v4469_v15 }
 0x414   : > { %4023 = vmatpush3.bf16.msra.mxu0 %v4355_v37 }
 0x415   : > { %4024 = vmatprep.subr.bf16.mxu0 %v4469_v15 }
 0x418   : > { %4025 = vmatpush3.bf16.msra.mxu0 %v4356_v38 }
 0x419   : > { %4036 = vmatprep.subr.bf16.mxu0 %v4469_v15 }
 0x41b   : > { %4027 = vmatmul.mubr.msk.bf16.vlgmr.msra.gmra.mrb[28].mxu0 %vm1471_vm6, %v4872_v23 }
 0x41c   : > { %4037 = vmatpush3.bf16.msra.mxu0 %v4357_v39  ;;  %4044 = vmatprep.mubr.msk.bf16.mxu0 %vm4470_vm3, %v4469_v15 }
 0x41d   : > { %4038 = vmatprep.subr.bf16.mxu0 %v4469_v15 }
 0x420   : > { %4039 = vmatpush3.bf16.msra.mxu0 %v4358_v40  ;;  %v4378_v40 = vld [vmem:[%s5367_s7 + $0x48] sm:$0xff]  }
 0x421   : > { %4040 = vmatprep.subr.bf16.mxu0 %v4469_v15 }
 0x424   : > { %4041 = vmatpush3.bf16.msra.mxu0 %v4359_v41  ;;  %v4379_v41 = vld [vmem:[%s5367_s7 + $0x50] sm:$0xff]  }
 0x425   : > { %4042 = vmatprep.subr.bf16.mxu0 %v4469_v15 }
 0x428   : > { %4043 = vmatpush3.bf16.msra.mxu0 %v4360_v42  ;;  %v4380_v42 = vld [vmem:[%s5367_s7 + $0x58] sm:$0xff]  }
 0x429   : > { %4054 = vmatprep.subr.bf16.mxu0 %v4469_v15 }
 0x42b   : > { %4045 = vmatmul.mubr.msk.bf16.vlgmr.msra.gmra.mrb[32].mxu0 %vm1471_vm6, %v4872_v23 }
 0x42c   : > { %4055 = vmatpush3.bf16.msra.mxu0 %v4361_v43  ;;  %4062 = vmatprep.mubr.msk.bf16.mxu0 %vm4470_vm3, %v4469_v15  ;;  %v4381_v43 = vld [vmem:[%s5367_s7 + $0x60] sm:$0xff]  }
 0x42d   : > { %4056 = vmatprep.subr.bf16.mxu0 %v4469_v15 }
 0x430   : > { %4057 = vmatpush3.bf16.msra.mxu0 %v4362_v44  ;;  %v4382_v44 = vld [vmem:[%s5367_s7 + $0x68] sm:$0xff]  }
 0x431   : > { %4058 = vmatprep.subr.bf16.mxu0 %v4469_v15 }
 0x434   : > { %4059 = vmatpush3.bf16.msra.mxu0 %v4363_v45  ;;  %v4383_v45 = vld [vmem:[%s5367_s7 + $0x70] sm:$0xff]  }
 0x435   : > { %4060 = vmatprep.subr.bf16.mxu0 %v4469_v15 }
 0x438   : > { %4061 = vmatpush3.bf16.msra.mxu0 %v4364_v46  ;;  %v4384_v46 = vld [vmem:[%s5367_s7 + $0x78] sm:$0xff]  }
 0x43b   : > { %4063 = vmatmul.mubr.msk.bf16.vlgmr.msra.gmra.mrb[36].mxu0 %vm1471_vm6, %v4872_v23 }
 0x43c   : > { %2928 = vmatprep.mubr.bf16.mxu0 %v4466_v1 }
 0x4ae   : > { %v1509_v48 = vpop.f32.mrb[12].mxu0 }
 0x4af   : > { %v3938_v49 = vpop.f32.mrb[13].mxu0 }
 0x4b0   : > { %v1512_v50 = vpop.f32.mrb[14].mxu0  ;;  %v4387_v49 = vld [vmem:[%s5366_s6 + $0x110] sm:$0xff]  }
 0x4b1   : > { %v1520_v51 = vpack.c.bf16 %v1512_v50, %v1509_v48  ;;  %v3939_v52 = vpop.f32.mrb[15].mxu0  ;;  %v4386_v48 = vld [vmem:[%s5366_s6 + $0x108] sm:$0xff]   ;;  %v4388_v50 = vld [vmem:[%s5366_s6 + $0x118] sm:$0xff]  }
 0x4b2   : > { %v2775_v52 = vld [vmem:[%s5368_s8] sm:$0xff] }
 0x4b3   : > { %2781 = vperm.xlu1 %4257, %v2775_v52  }
 0x4b7   : > { %4259 = vset.pattern.permute.xlu1 %v4468_v6 }
 0x4b8   : > { %2804 = vperm.xlu1 %4259, %v2775_v52   ;;  %v3058_v52 = vld [vmem:[%s5371_s11 + $0x28] sm:$0xff] }
 0x4be   : > { %v1588_v53 = vpop.f32.mrb[16].mxu0 }
 0x4bf   : > { %v3950_v54 = vpop.f32.mrb[17].mxu0 }
 0x4c0   : > { %v1591_v55 = vpop.f32.mrb[18].mxu0  ;;  %v2778_v54 = vld [vmem:[%s5368_s8 + $0x18] sm:$0xff] }
 0x4c1   : > { %v1600_v56 = vpack.c.bf16 %v1591_v55, %v1588_v53  ;;  %v3951_v57 = vpop.f32.mrb[19].mxu0  ;;  %v2776_v53 = vld [vmem:[%s5368_s8 + $0x8] sm:$0xff] }
 0x4c2   : > { %2786 = vperm.xlu0 %4258, %v2776_v53   ;;  %2808 = vperm.xlu1 %4259, %v2776_v53  }
 0x4c3   : > { %3952 = vmatprep.subr.bf16.mxu1 %v1600_v56 }
 0x4c4   : > { %3953 = vmatpush3.bf16.msra.mxu1 %v1600_v56 }
 0x4c5   : > { %3958 = vmatprep.subr.bf16.mxu1 %v1520_v51 }
 0x4c6   : > { %4260 = vset.pattern.permute.xlu1 %v4466_v1 }
 0x4c7   : > { %3955 = vmatmul.mubr.msk.bf16.vlgmr.msra.gmra.mrb[12].mxu1 %vm1611_vm7, %v4366_v58  ;;  %2796 = vperm.xlu1 %4260, %v2778_v54  }
 0x4c8   : > { %3959 = vmatpush3.bf16.msra.mxu1 %v1520_v51  ;;  %3960 = vmatprep.mubr.msk.bf16.mxu1 %vm1611_vm7, %v4367_v59  ;;  %v4389_v51 = vld [vmem:[%s5367_s7 + $0x80] sm:$0xff]  }
 0x4cb   : > { %4262 = vset.pattern.permute.xlu1 %v4468_v6 }
 0x4cc   : > { %2816 = vperm.xlu1 %4262, %v2778_v54   ;;  %v3076_v54 = vld [vmem:[%s5371_s11 + $0xb8] sm:$0xff] }
 0x4ce   : > { %v1799_v60 = vpop.f32.mrb[20].mxu0 }
 0x4cf   : > { %v3974_v61 = vpop.f32.mrb[21].mxu0 }
 0x4d0   : > { %v1802_v63 = vpop.f32.mrb[22].mxu0  ;;  %v4393_v61 = vld [vmem:[%s5369_s9 + $0x4] ss:$12 sps:$4 sm:$0xff]  }
 0x4d1   : > { %v1811_v2 = vpack.c.bf16 %v1802_v63, %v1799_v60  ;;  %v3975_v7 = vpop.f32.mrb[23].mxu0  ;;  %v4390_v60 = vld [vmem:[%s5367_s7 + $0x88] sm:$0xff]   ;;  %2896 = vmatprep.subr.bf16.mxu0 %v4393_v61  ;;  %v4394_v63 = vld [vmem:[%s5369_s9 + $0x18] ss:$12 sps:$4 sm:$0xff]  }
 0x4d3   : > { %3961 = vmatmul.mubr.msk.bf16.vlgmr.msra.gmra.mrb[12].mxu1 %vm1611_vm7, %v4368_v62  ;;  %3976 = vmatprep.subr.bf16.mxu1 %v1811_v2  ;;  %v4396_v62 = vld [vmem:[%s5369_s9 + $0x1c] ss:$12 sps:$4 sm:$0xff]  }
 0x4d4   : > { %3977 = vmatpush3.bf16.msra.mxu1 %v1811_v2  ;;  %3978 = vmatprep.mubr.msk.bf16.mxu1 %vm1611_vm7, %v4369_v0  ;;  %v2837_v0 = vld [vmem:[%s5369_s9 + $0x30] sm:$0x33] }
 0x4d5   : > { %v3675_v2 = vcombine.high %v2837_v0, %v2837_v0  ;;  %v3674_v7 = vcombine.low %v2837_v0, %v2837_v0  ;;  %v3079_v0 = vld [vmem:[%s5371_s11 + $0xd0] sm:$0xff] }
 0x4de   : > { %v1948_v5 = vpop.f32.mrb[24].mxu0 }
 0x4df   : > { %3979 = vmatmul.mubr.msk.bf16.vlgmr.msra.gmra.mrb[12].mxu1 %vm1611_vm7, %v4370_v3  ;;  %v3992_v8 = vpop.f32.mrb[25].mxu0  ;;  %v2888_v3 = vsel %vm2886_vm8, %v3674_v7, 0 }
 0x4e0   : > { %v1951_v9 = vpop.f32.mrb[26].mxu0  ;;  %3996 = vmatprep.mubr.msk.bf16.mxu1 %vm1611_vm7, %v4371_v4  ;;  %v4399_v4 = vld [vmem:[%s5369_s9 + $0x8] ss:$12 sps:$4 sm:$0xff]  }
 0x4e1   : > { %v1960_v10 = vpack.c.bf16 %v1951_v9, %v1948_v5  ;;  %v3993_v11 = vpop.f32.mrb[27].mxu0  ;;  %v3069_v5 = vld [vmem:[%s5371_s11 + $0x80] sm:$0xff]  ;;  %v3070_v8 = vld [vmem:[%s5371_s11 + $0x88] sm:$0xff] }
 0x4e2   : > { %v3053_v9 = vld [vmem:[%s5371_s11] sm:$0xff]  ;;  %v3054_v11 = vld [vmem:[%s5371_s11 + $0x8] sm:$0xff] }
 0x4e3   : > { %3994 = vmatprep.subr.bf16.mxu1 %v1960_v10 }
 0x4e4   : > { %3995 = vmatpush3.bf16.msra.mxu1 %v1960_v10  ;;  %v4119_v10 = vpack.c.bf16 %v3070_v8, %v3069_v5  ;;  %v3081_v8 = vld [vmem:[%s5371_s11 + $0xe0] sm:$0xff] }
 0x4e5   : > { %4000 = vmatprep.subr.bf16.mxu1 %v4469_v15 }
 0x4eb   : > { %3997 = vmatmul.mubr.msk.bf16.vlgmr.msra.gmra.mrb[12].mxu1 %vm1611_vm7, %v4372_v12  ;;  %v4121_v12 = vpack.c.bf16 %v3054_v11, %v3053_v9  ;;  %v3082_v9 = vld [vmem:[%s5371_s11 + $0xe8] sm:$0xff]  ;;  %v3065_v11 = vld [vmem:[%s5371_s11 + $0x60] sm:$0xff] }
 0x4ec   : > { %4001 = vmatpush3.bf16.msra.mxu1 %v4373_v13  ;;  %4008 = vmatprep.mubr.msk.bf16.mxu1 %vm4470_vm3, %v4469_v15 }
 0x4ed   : > { %4002 = vmatprep.subr.bf16.mxu1 %v4469_v15 }
 0x4ee   : > { %v2246_v16 = vpop.f32.mrb[28].mxu0 }
 0x4ef   : > { %v4028_v17 = vpop.f32.mrb[29].mxu0 }
 0x4f0   : > { %4003 = vmatpush3.bf16.msra.mxu1 %v4374_v14  ;;  %v2249_v18 = vpop.f32.mrb[30].mxu0 }
 0x4f1   : > { %v2258_v20 = vpack.c.bf16 %v2249_v18, %v2246_v16  ;;  %v4029_v21 = vpop.f32.mrb[31].mxu0  ;;  %4004 = vmatprep.subr.bf16.mxu1 %v4469_v15 }
 0x4f4   : > { %4005 = vmatpush3.bf16.msra.mxu1 %v4375_v19 }
 0x4f5   : > { %4006 = vmatprep.subr.bf16.mxu1 %v4469_v15 }
 0x4f8   : > { %4007 = vmatpush3.bf16.msra.mxu1 %v4376_v22 }
 0x4fb   : > { %4009 = vmatmul.mubr.msk.bf16.vlgmr.msra.gmra.mrb[16].mxu1 %vm1471_vm6, %v4872_v23 }
 0x4fc   : > { %4014 = vmatprep.mubr.msk.bf16.mxu1 %vm1611_vm7, %v4377_v34 }
 0x4fe   : > { %v2395_v24 = vpop.f32.mrb[32].mxu0 }
 0x4ff   : > { %v4046_v25 = vpop.f32.mrb[33].mxu0 }
 0x500   : > { %v2398_v26 = vpop.f32.mrb[34].mxu0 }
 0x501   : > { %v2407_v27 = vpack.c.bf16 %v2398_v26, %v2395_v24  ;;  %v4047_v28 = vpop.f32.mrb[35].mxu0 }
 0x50e   : > { %v2544_v29 = vpop.f32.mrb[36].mxu0 }
 0x50f   : > { %v4064_v30 = vpop.f32.mrb[37].mxu0 }
 0x510   : > { %v2547_v31 = vpop.f32.mrb[38].mxu0 }
 0x511   : > { %v2556_v32 = vpack.c.bf16 %v2547_v31, %v2544_v29  ;;  %v4065_v33 = vpop.f32.mrb[39].mxu0 }
 0x532   : > { %v2782_v13 = vpop.permute.xlu1 %2781 }
 0x537   : > { %v2805_v14 = vpop.permute.xlu1 %2804 }
 0x541   : > { %v2787_v16 = vpop.permute.xlu0 %2786  ;;  %v2809_v17 = vpop.permute.xlu1 %2808 }
 0x546   : > { %v2797_v19 = vpop.permute.xlu1 %2796 }
 0x5ce   : > { %v2097_v35 = vpop.f32.mrb[16].mxu1 }
 0x5cf   : > { %v4010_v36 = vpop.f32.mrb[17].mxu1 }
 0x5d0   : > { %v2100_v37 = vpop.f32.mrb[18].mxu1 }
 0x5d1   : > { %v2109_v38 = vpack.c.bf16 %v2100_v37, %v2097_v35  ;;  %v4011_v39 = vpop.f32.mrb[19].mxu1 }
 0x5d3   : > { %4012 = vmatprep.subr.bf16.mxu1 %v2109_v38 }
 0x5d4   : > { %4013 = vmatpush3.bf16.msra.mxu1 %v2109_v38 }
 0x5d5   : > { %4030 = vmatprep.subr.bf16.mxu1 %v2258_v20 }
 0x5d7   : > { %4015 = vmatmul.mubr.msk.bf16.vlgmr.msra.gmra.mrb[12].mxu1 %vm1611_vm7, %v4378_v40 }
 0x5d8   : > { %4031 = vmatpush3.bf16.msra.mxu1 %v2258_v20  ;;  %4032 = vmatprep.mubr.msk.bf16.mxu1 %vm1611_vm7, %v4379_v41  ;;  %v4400_v41 = vld [vmem:[%s5369_s9 + $0x20] ss:$12 sps:$4 sm:$0xff]  }
 0x5d9   : > { %4048 = vmatprep.subr.bf16.mxu1 %v2407_v27 }
 0x5e3   : > { %4033 = vmatmul.mubr.msk.bf16.vlgmr.msra.gmra.mrb[12].mxu1 %vm1611_vm7, %v4380_v42  ;;  %v4401_v42 = vld [vmem:[%s5369_s9 + $0x38] ss:$0 sps:$4 sm:$0x33]  }
 0x5e4   : > { %4049 = vmatpush3.bf16.msra.mxu1 %v2407_v27  ;;  %4050 = vmatprep.mubr.msk.bf16.mxu1 %vm1611_vm7, %v4381_v43  ;;  %v2817_v27 = vpop.permute.xlu1 %2816  ;;  %v2894_v43 = vsel %vm2886_vm8, %v4401_v42, 0 }
 0x5e5   : > { %4066 = vmatprep.subr.bf16.mxu1 %v2556_v32 }
 0x5ef   : > { %4051 = vmatmul.mubr.msk.bf16.vlgmr.msra.gmra.mrb[12].mxu1 %vm1611_vm7, %v4382_v44  ;;  %v3072_v44 = vld [vmem:[%s5371_s11 + $0x98] sm:$0xff] }
 0x5f0   : > { %4067 = vmatpush3.bf16.msra.mxu1 %v2556_v32  ;;  %4068 = vmatprep.mubr.msk.bf16.mxu1 %vm1611_vm7, %v4383_v45 }
 0x5f1   : > { %4072 = vmatprep.subr.bf16.mxu1 %v4469_v15 }
 0x5fb   : > { %4069 = vmatmul.mubr.msk.bf16.vlgmr.msra.gmra.mrb[12].mxu1 %vm1611_vm7, %v4384_v46  ;;  %v3055_v46 = vld [vmem:[%s5371_s11 + $0x10] sm:$0xff] }
 0x5fc   : > { %4073 = vmatpush3.bf16.msra.mxu1 %v4385_v47  ;;  %4080 = vmatprep.mubr.msk.bf16.mxu1 %vm4470_vm3, %v4469_v15  ;;  %v3056_v47 = vld [vmem:[%s5371_s11 + $0x18] sm:$0xff] }
 0x5fd   : > { %4074 = vmatprep.subr.bf16.mxu1 %v4469_v15 }
 0x600   : > { %4075 = vmatpush3.bf16.msra.mxu1 %v4386_v48  ;;  %v4125_v48 = vpack.c.bf16 %v3056_v47, %v3055_v46 }
 0x601   : > { %4076 = vmatprep.subr.bf16.mxu1 %v4469_v15 }
 0x604   : > { %4077 = vmatpush3.bf16.msra.mxu1 %v4387_v49  ;;  %v3074_v49 = vld [vmem:[%s5371_s11 + $0xa8] sm:$0xff] }
 0x605   : > { %4078 = vmatprep.subr.bf16.mxu1 %v4469_v15 }
 0x608   : > { %4079 = vmatpush3.bf16.msra.mxu1 %v4388_v50 }
 0x60b   : > { %4081 = vmatmul.mubr.msk.bf16.vlgmr.msra.gmra.mrb[20].mxu1 %vm1471_vm6, %v4872_v23  ;;  %v2777_v23 = vld [vmem:[%s5368_s8 + $0x10] sm:$0xff] }
 0x60c   : > { %4086 = vmatprep.mubr.msk.bf16.mxu1 %vm1611_vm7, %v4389_v51  ;;  %2791 = vperm.xlu0 %4258, %v2777_v23   ;;  %v3057_v51 = vld [vmem:[%s5371_s11 + $0x20] sm:$0xff] }
 0x60d   : > { %v4129_v53 = vpack.c.bf16 %v3058_v52, %v3057_v51 }
 0x610   : > { %4261 = vset.pattern.permute.xlu0 %v4468_v6  ;;  %v4391_v6 = vld [vmem:[%s5369_s9] ss:$12 sps:$4 sm:$0xff]  }
 0x611   : > { %2812 = vperm.xlu0 %4261, %v2777_v23   ;;  %2897 = vmatpush1.bf16.msra.mxu0 %v4391_v6  ;;  %v3075_v23 = vld [vmem:[%s5371_s11 + $0xb0] sm:$0xff]  ;;  %v3061_v6 = vld [vmem:[%s5371_s11 + $0x40] sm:$0xff] }
 0x612   : > { %2898 = vmatprep.subr.bf16.mxu0 %v4396_v62  ;;  %v3062_v62 = vld [vmem:[%s5371_s11 + $0x48] sm:$0xff] }
 0x615   : > { %2899 = vmatpush1.bf16.msra.mxu0 %v4394_v63  ;;  %v4137_v63 = vpack.c.bf16 %v3062_v62, %v3061_v6  ;;  %v3000_v62 = vld [vmem:[%s5370_s10 + $0x10] sm:$0xff] }
 0x616   : > { %3677 = vmatprep.subr.msk.bf16.mxu0 %vm2886_vm8, %v3675_v2  ;;  %v3080_v2 = vld [vmem:[%s5371_s11 + $0xd8] sm:$0xff] }
 0x617   : > { %v4139_v7 = vpack.c.bf16 %v3080_v2, %v3079_v0 }
 0x619   : > { %2901 = vmatpush1.bf16.msra.mxu0 %v2888_v3  ;;  %v3063_v3 = vld [vmem:[%s5371_s11 + $0x50] sm:$0xff] }
 0x61a   : > { %4090 = vmatprep.subr.bf16.mxu0 %v4399_v4 }
 0x68b   : > { %v2792_v18 = vpop.permute.xlu0 %2791 }
 0x690   : > { %v2813_v21 = vpop.permute.xlu0 %2812 }
 0x6de   : > { %v2693_v55 = vpop.f32.mrb[20].mxu1 }
 0x6df   : > { %v4082_v56 = vpop.f32.mrb[21].mxu1 }
 0x6e0   : > { %v2696_v57 = vpop.f32.mrb[22].mxu1  ;;  %v3059_v56 = vld [vmem:[%s5371_s11 + $0x30] sm:$0xff] }
 0x6e1   : > { %v2705_v58 = vpack.c.bf16 %v2696_v57, %v2693_v55  ;;  %v4083_v59 = vpop.f32.mrb[23].mxu1  ;;  %v4131_v55 = vpack.c.bf16 %v3076_v54, %v3075_v23  ;;  %v3060_v57 = vld [vmem:[%s5371_s11 + $0x38] sm:$0xff] }
 0x6e2   : > { %v3077_v59 = vld [vmem:[%s5371_s11 + $0xc0] sm:$0xff] }
 0x6e3   : > { %4084 = vmatprep.subr.bf16.mxu1 %v2705_v58 }
 0x6e4   : > { %4085 = vmatpush3.bf16.msra.mxu1 %v2705_v58  ;;  %v4133_v58 = vpack.c.bf16 %v3060_v57, %v3059_v56 }
 0x6e5   : > { %4120 = vmatprep.subr.bf16.mxu1 %v4119_v10  ;;  %v4143_v10 = vpack.c.bf16 %v3082_v9, %v3081_v8 }
 0x6e7   : > { %4087 = vmatmul.mubr.msk.bf16.vlgmr.msra.gmra.mrb[12].mxu1 %vm1611_vm7, %v4390_v60  ;;  %v3078_v60 = vld [vmem:[%s5371_s11 + $0xc8] sm:$0xff] }
 0x6e8   : > { %4122 = vmatpush3.bf16.msra.mxu1 %v4121_v12  ;;  %v4135_v61 = vpack.c.bf16 %v3078_v60, %v3077_v59  ;;  %v3066_v12 = vld [vmem:[%s5371_s11 + $0x68] sm:$0xff] }
 0x7ba   : > { %v4088_v20 = vpop.f32.mrb[12].mxu1 }
 0x7bb   : > { %v2801_v22 = vmul.f32 %v4088_v20, %v2792_v18  ;;  %v2756_v24 = vpop.f32.mrb[13].mxu1  ;;  %v3067_v18 = vld [vmem:[%s5371_s11 + $0x70] sm:$0xff]  ;;  %v3085_v20 = vld [vmem:[%s5371_s11 + $0x100] sm:$0xff] }
 0x7bc   : > { %v2799_v25 = vmul.f32 %v2782_v13, %v2756_v24  ;;  %v4089_v26 = vpop.f32.mrb[14].mxu1  ;;  %v4145_v13 = vpack.c.bf16 %v3066_v12, %v3065_v11  ;;  %v4471_v24 = vmov 0.0|0.0   ;;  %v3009_v11 = vld [vmem:[%s5370_s10 + $0x58] sm:$0xff] }
 0x7bd   : > { %v2821_v28 = vadd.f32 %v2813_v21, %v2801_v22  ;;  %v2802_v29 = vmul.f32 %v4089_v26, %v2797_v19  ;;  %v2759_v30 = vpop.f32.mrb[15].mxu1  ;;  %v3068_v19 = vld [vmem:[%s5371_s11 + $0x78] sm:$0xff]  ;;  %v3086_v22 = vld [vmem:[%s5371_s11 + $0x108] sm:$0xff]  ;;  %v3087_v26 = vld [vmem:[%s5371_s11 + $0x110] sm:$0xff] }
 0x7be   : > { %v2819_v31 = vadd.f32 %v2805_v14, %v2799_v25  ;;  %v2800_v32 = vmul.f32 %v2787_v16, %v2759_v30  ;;  %v3083_v14 = vld [vmem:[%s5371_s11 + $0xf0] sm:$0xff]  ;;  %v3084_v16 = vld [vmem:[%s5371_s11 + $0xf8] sm:$0xff]  ;;  %v4149_v21 = vpack.c.bf16 %v3068_v19, %v3067_v18  ;;  %v4152_v25 = vpack.c.bf16 %v3086_v22, %v3085_v20  ;;  %v3090_v30 = vld [vmem:[%s5371_s11 + $0x128] sm:$0xff] }
 0x7bf   : > { %v2822_v33 = vadd.f32 %v2817_v27, %v2802_v29  ;;  %v2825_v35 = vmax.f32 %v2821_v28, 0.0  ;;  %v3088_v27 = vld [vmem:[%s5371_s11 + $0x118] sm:$0xff]  ;;  %v3089_v29 = vld [vmem:[%s5371_s11 + $0x120] sm:$0xff] }
 0x7c0   : > { %v2820_v34 = vadd.f32 %v2809_v17, %v2800_v32  ;;  %v2823_v37 = vmax.f32 %v2819_v31, 0.0  ;;  %v4147_v17 = vpack.c.bf16 %v3084_v16, %v3083_v14  ;;  %v4155_v28 = vpack.c.bf16 %v3088_v27, %v3087_v26  ;;  %v3091_v32 = vld [vmem:[%s5371_s11 + $0x130] sm:$0xff] }
 0x7c1   : > { %v2826_v36 = vmax.f32 %v2822_v33, 0.0  ;;  %v4158_v31 = vpack.c.bf16 %v3090_v30, %v3089_v29  ;;  %v3092_v33 = vld [vmem:[%s5371_s11 + $0x138] sm:$0xff] }
 0x7c2   : > { %v2824_v38 = vmax.f32 %v2820_v34, 0.0  ;;  %v4161_v34 = vpack.c.bf16 %v3092_v33, %v3091_v32 }
 0x7c3   : > { %v2828_v39 = vpack.c.bf16 %v2826_v36, %v2825_v35  ;;  %v2998_v36 = vld [vmem:[%s5370_s10] sm:$0xff] }
 0x7c4   : > { %v2827_v40 = vpack.c.bf16 %v2824_v38, %v2823_v37  ;;  %v3001_v37 = vld [vmem:[%s5370_s10 + $0x18] sm:$0xff] }
 0x7c6   : > { %3678 = vmatmul.mubr.msk.bf16.vlgmr.msra.gmra.mrb[40].mxu0 %vm2879_vm9, %v2827_v40 }
 0x7c7   : > { %4091 = vmatpush3.bf16.msra.mxu0 %v4399_v4  ;;  %2938 = vmatprep.mubr.bf16.mxu0 %v4466_v1  ;;  %v3071_v1 = vld [vmem:[%s5371_s11 + $0x90] sm:$0xff]  ;;  %v3064_v4 = vld [vmem:[%s5371_s11 + $0x58] sm:$0xff] }
 0x7c8   : > { %4092 = vmatprep.subr.bf16.mxu0 %v4400_v41  ;;  %v4123_v45 = vpack.c.bf16 %v3072_v44, %v3071_v1  ;;  %v4141_v5 = vpack.c.bf16 %v3064_v4, %v3063_v3  ;;  %v3003_v4 = vld [vmem:[%s5370_s10 + $0x28] sm:$0xff] }
 0x7ca   : > { %4124 = vmatprep.subr.bf16.mxu1 %v4123_v45 }
 0x7cb   : > { %4093 = vmatpush3.bf16.msra.mxu0 %v4400_v41  ;;  %4126 = vmatpush3.bf16.msra.mxu1 %v4125_v48  ;;  %v3004_v48 = vld [vmem:[%s5370_s10 + $0x30] sm:$0xff] }
 0x7cc   : > { %4207 = vmatprep.subr.msk.bf16.mxu0 %vm2886_vm8, %v4401_v42 }
 0x7ce   : > { %3679 = vmatmul.mubr.msk.bf16.gmra.mrb[44].mxu0 %vm2879_vm9, %v2828_v39 }
 0x7cf   : > { %4096 = vmatprep.mubr.msk.bf16.mxu0 %vm2879_vm9, %v2827_v40  ;;  %4095 = vmatpush3.bf16.msra.mxu0 %v2894_v43  ;;  %v3002_v40 = vld [vmem:[%s5370_s10 + $0x20] sm:$0xff] }
 0x7d0   : > { %4151 = vmatprep.subr.bf16.mxu0 %v4471_v24 }
 0x7d6   : > { %4097 = vmatmul.mubr.msk.bf16.vlgmr.msra.gmra.mrb[48].mxu0 %vm2879_vm9, %v2828_v39  ;;  %v2999_v39 = vld [vmem:[%s5370_s10 + $0x8] sm:$0xff] }
 0x7d7   : > { %4116 = vmatprep.mubr.msk.f32.mxu0 %vm4470_vm3, %v4469_v15  ;;  %v3073_v15 = vld [vmem:[%s5371_s11 + $0xa0] sm:$0xff]  ;;  %4153 = vmatpush3.bf16.msra.mxu0 %v4152_v25 }
 0x7d8   : > { %v4127_v50 = vpack.c.bf16 %v3074_v49, %v3073_v15  ;;  %4154 = vmatprep.subr.bf16.mxu0 %v4471_v24  ;;  %v3005_v15 = vld [vmem:[%s5370_s10 + $0x38] sm:$0xff] }
 0x7da   : > { %4128 = vmatprep.subr.bf16.mxu1 %v4127_v50  ;;  %v3007_v50 = vld [vmem:[%s5370_s10 + $0x48] sm:$0xff] }
 0x7db   : > { %4130 = vmatpush3.bf16.msra.mxu1 %v4129_v53  ;;  %4156 = vmatpush3.bf16.msra.mxu0 %v4155_v28  ;;  %v3008_v53 = vld [vmem:[%s5370_s10 + $0x50] sm:$0xff] }
 0x7dc   : > { %4132 = vmatprep.subr.bf16.mxu1 %v4131_v55  ;;  %4157 = vmatprep.subr.bf16.mxu0 %v4471_v24 }
 0x7df   : > { %4134 = vmatpush3.bf16.msra.mxu1 %v4133_v58  ;;  %4159 = vmatpush3.bf16.msra.mxu0 %v4158_v31 }
 0x7e0   : > { %4136 = vmatprep.subr.bf16.mxu1 %v4135_v61  ;;  %4160 = vmatprep.subr.bf16.mxu0 %v4471_v24 }
 0x7e3   : > { %4138 = vmatpush3.bf16.msra.mxu1 %v4137_v63  ;;  %4162 = vmatpush3.bf16.msra.mxu0 %v4161_v34 }
 0x7e4   : > { %4140 = vmatprep.subr.bf16.mxu1 %v4139_v7  ;;  %v3006_v7 = vld [vmem:[%s5370_s10 + $0x40] sm:$0xff] }
 0x7e7   : > { %4142 = vmatpush3.bf16.msra.mxu1 %v4141_v5 }
 0x7e8   : > { %4144 = vmatprep.subr.bf16.mxu1 %v4143_v10 }
 0x7eb   : > { %4146 = vmatpush3.bf16.msra.mxu1 %v4145_v13 }
 0x7ec   : > { %4148 = vmatprep.subr.bf16.mxu1 %v4147_v17 }
 0x7ef   : > { %4150 = vmatpush3.bf16.msra.mxu1 %v4149_v21 }
 0x899   : > { %v2930_v35 = vpop.f32.mrb[40].mxu0 }
 0x89a   : > { %v2932_v38 = vpop.f32.mrb[41].mxu0  ;;  %v3010_v42 = vmul.f32 %v2998_v36, %v2930_v35 }
 0x89b   : > { %v2934_v41 = vpop.f32.mrb[42].mxu0  ;;  %v3011_v44 = vmul.f32 %v2999_v39, %v2932_v38 }
 0x89c   : > { %v3013_v43 = vmul.f32 %v3001_v37, %v2934_v41  ;;  %v2936_v1 = vpop.f32.mrb[43].mxu0 }
 0x89d   : > { %v3014_v45 = vmul.f32 %v3002_v40, %v2936_v1 }
 0x89e   : > { %v3022_v46 = vadd.f32 %v3013_v43, %v3010_v42 }
 0x89f   : > { %v3031_v47 = vadd.f32 %v3014_v45, %v3011_v44 }
 0x8a1   : > { %v2940_v49 = vpop.f32.mrb[44].mxu0 }
 0x8a2   : > { %v3016_v51 = vmul.f32 %v3004_v48, %v2940_v49  ;;  %v2942_v52 = vpop.f32.mrb[45].mxu0 }
 0x8a3   : > { %v3017_v23 = vmul.f32 %v3005_v15, %v2942_v52  ;;  %v2944_v54 = vpop.f32.mrb[46].mxu0 }
 0x8a4   : > { %v3023_v55 = vadd.f32 %v3022_v46, %v3016_v51  ;;  %v3019_v56 = vmul.f32 %v3007_v50, %v2944_v54  ;;  %v2946_v57 = vpop.f32.mrb[47].mxu0 }
 0x8a5   : > { %v3032_v58 = vadd.f32 %v3031_v47, %v3017_v23  ;;  %v3020_v59 = vmul.f32 %v3008_v53, %v2946_v57 }
 0x8a6   : > { %v3024_v60 = vadd.f32 %v3023_v55, %v3019_v56 }
 0x8a7   : > { %v3033_v61 = vadd.f32 %v3032_v58, %v3020_v59 }
 0x8a8   : > { %v3025_v6 = vrot.slane %v3024_v60, 4 }
 0x8a9   : > { %v3034_v63 = vrot.slane %v3033_v61, 4  ;;  %v4098_v0 = vpop.f32.mrb[48].mxu0 }
 0x8aa   : > { %v3026_v2 = vadd.f32 %v3025_v6, %v3024_v60  ;;  %v2983_v3 = vpop.f32.mrb[49].mxu0  ;;  %v3018_v14 = vmul.f32 %v4098_v0, %v3006_v7 }
 0x8ab   : > { %v3035_v5 = vadd.f32 %v3034_v63, %v3033_v61  ;;  %v3012_v8 = vmul.f32 %v3000_v62, %v2983_v3  ;;  %v4099_v9 = vpop.f32.mrb[50].mxu0 }
 0x8ac   : > { %v3027_v10 = vrot.slane %v3026_v2, 2  ;;  %v2986_v12 = vpop.f32.mrb[51].mxu0  ;;  %v3021_v19 = vmul.f32 %v4099_v9, %v3009_v11  ;;  %v3043_v25 = vsel %vm1471_vm6, %v3018_v14, 0.0 }
 0x8ad   : > { %v3036_v13 = vrot.slane %v3035_v5, 2  ;;  %v3015_v16 = vmul.f32 %v3003_v4, %v2986_v12  ;;  %v3040_v18 = vsel %vm1471_vm6, %v3012_v8, 0.0 }
 0x8ae   : > { %v3028_v17 = vadd.f32 %v3027_v10, %v3026_v2  ;;  %v3045_v28 = vsel %vm1471_vm6, %v3021_v19, 0.0 }
 0x8af   : > { %v3041_v20 = vsel %vm1471_vm6, %v3015_v16, 0.0  ;;  %v3037_v21 = vadd.f32 %v3036_v13, %v3035_v5 }
 0x8b0   : > { %v3029_v22 = vrot.slane %v3028_v17, 1  ;;  %v3042_v24 = vadd.f32 %v3041_v20, %v3040_v18 }
 0x8b1   : > { %v3038_v26 = vrot.slane %v3037_v21, 1 }
 0x8b2   : > { %v3044_v27 = vadd.f32 %v3043_v25, %v3042_v24  ;;  %v3030_v31 = vadd.f32 %v3029_v22, %v3028_v17 }
 0x8b3   : > { %v3039_v29 = vadd.f32 %v3038_v26, %v3037_v21 }
 0x8b4   : > { %v3046_v30 = vadd.f32 %v3045_v28, %v3044_v27 }
 0x8b5   : > { %3160 = vmatprep.mubr.f32.mxu1 %v3039_v29 }
 0x8b6   : > { %v3047_v32 = vrot.slane %v3046_v30, 4  ;;  %3161 = vmatmul.mubr.f32.vlgmr.msra.gmra.mrb[24].mxu1 %v3030_v31 }
 0x8b8   : > { %v3048_v33 = vadd.f32 %v3047_v32, %v3046_v30 }
 0x8ba   : > { %v3049_v34 = vrot.slane %v3048_v33, 2 }
 0x8bc   : > { %v3050_v35 = vadd.f32 %v3049_v34, %v3048_v33 }
 0x8be   : > { %v3051_v36 = vrot.slane %v3050_v35, 1 }
 0x8c0   : > { %v3052_v37 = vadd.f32 %v3051_v36, %v3050_v35 }
 0x8c2   : > { %4117 = vmatmul.mubr.msk.f32.vlgmr.msra.gmra.mrb[52].mxu0 %vm1471_vm6, %v3052_v37 }
 0x989   : > { %v3892_v38 = vpop.f32.mrb[24].mxu1 }
 0x98a   : > { %v3893_v39 = vpop.f32.mrb[25].mxu1 }
 0x98b   : > { %v3894_v40 = vadd.f32 %v3893_v39, %v3892_v38 }
 0x995   : > { %v3232_v41 = vpop.f32.mrb[52].mxu0 }
 0x996   : > { %v3233_v42 = vadd.f32 %v3894_v40, %v3232_v41  ;;  %v4118_v43 = vpop.f32.mrb[53].mxu0 }
 0x998   : > { %3237 = vst.msk [vmem:[%s405_s29] sm:$0x1] %vm3236_vm10, %v3233_v42 }
 0x999   : > { %4415 = shalt.err (!%p4412_p3)
}
 0x99a   : > { %s4416_s0 = scalar_lea.hbm %s5318_s18, 16  ;;  %s4420_s17 = scalar_lea.hbm %s5372_s12, 32 }
 0x99b   : > { %p4417_p4 = scmp.ne.s32.totalorder %s5318_s18, %s4416_s0  ;;  %p4421_p9 = scmp.lt.u32.totalorder %s5318_s18, %s5372_s12 }
 0x99c   : > { %p4422_p10 = scmp.lt.u32.totalorder %s4420_s17, %s4416_s0  ;;  %p4424_p12 = scmp.lt.u32.totalorder %s4416_s0, %s5318_s18 }
 0x99d   : > { %p4418_p7 = pnand %p4417_p4, %p4576_p5 }
 0x99e   : > { %p4423_p11 = por %p4422_p10, %p4421_p9 }
 0x99f   : > { %p4419_p8 = pneg %p4418_p7 }
 0x9a0   : > { %p4425_p13 = por %p4424_p12, %p4423_p11 }
 0x9a2   : > { %p4426_p0 = pnand %p4425_p13, %p4419_p8 }
 0x9a4   : > { %4429 = shalt.err (!%p4426_p0)
}
 0x9a5   : > { %4208 = dma.vmem_to_hbm [thread:$0]  (%p4576_p5), %s5320_s16, 16, %s5318_s18, %s3239_s20  }
 0x9a6 PF: > { %p4214_p1 = scmp.ge.s32.totalorder %s4464_s24, 2  ;;  %s3263_s1 = sand.u32 1, %s4452_s21  }
 0x9a7   : > { %s3264_s26 = scalar_lea.sflag [#allocation3], %s3263_s1 }
 0x9a8   : > { %p4211_p2 = pnand %p4214_p1, %p4580_p6 }
 0x9aa   : > { %4447 = dma.done.wait (!%p4211_p2), %s3264_s26, 16  }
 0x9ab   : > { %4449 = vsyncadd (!%p4211_p2), %s3264_s26, 4294967280  ;;  %p22_p3 = scmp.ge.s32.totalorder %s4563_s27, 4   ;;  %s5379_s21 = smov %s4456_s22 }
 0x9ac   : > { %s5380_s22 = smov %s4460_s23  ;;  %s5381_s23 = smov %s4574_s30 }
 0x9ad   : > { %s5382_s24 = smov %s4563_s27  ;;  %24 = sbr.rel (!%p22_p3) target bundleno = 6 (0x6), region = 125 }
 0x9b4   :  { %3268 = vsyncpa [#allocation3], 1 }
 0x9b5   :  { %3270 = vsyncpa [#allocation3 + $0x1], 1 }

</bundles_post_ra>
